<compile_context>
chip_gen: v7x
topology: tpu7x:2x2x1
jax: 0.10.0
libtpu: 0.0.40
codegen_flags: <defaults>
</compile_context>

<pallas_src>
import functools

import jax
import jax.numpy as jnp
from jax.experimental import pallas as pl
from jax.experimental.pallas import tpu as pltpu

LANE = 128
F_PAD = 8          # node-feature dim padded only to a sublane multiple, not 128


def _round_up(v, m):
    return (v + m - 1) // m * m


# ----------------------------------------------------------------------------
# Fused kernel: block-diagonal GCN x3 -> mean pool (matmul) -> Linear(512)
# -> MLP(1024 -> OP).  Grid of G half-batches.
# ----------------------------------------------------------------------------
def _g2g_fused_kernel(a_ref, x_ref, p_ref,
                      w1_ref, b1_ref, w2_ref, b2_ref, w3_ref, b3_ref,
                      wp_ref, bp_ref, wm1_ref, bm1_ref, wm2_ref, bm2_ref,
                      o_ref):
    f32 = jnp.float32
    bf16 = jnp.bfloat16

    a = a_ref[0]       # [M, M]   bf16 block-diagonal normalized adjacency
    h = x_ref[0]       # [M, FP]  bf16 stacked node features
    pmat = p_ref[0]    # [Bh, M]  bf16 mean-pool matrix (1/N on own graph's node rows)

    def gcn(hb, w_ref, b_ref):
        # GCNConv: relu( A_norm @ (H @ W) + b ); bf16 MXU, f32 accumulation.
        z = jnp.dot(hb, w_ref[...], preferred_element_type=f32)
        z = jnp.dot(a, z.astype(bf16), preferred_element_type=f32) + b_ref[...]
        return jnp.maximum(z, 0.0).astype(bf16)

    h = gcn(h, w1_ref, b1_ref)
    h = gcn(h, w2_ref, b2_ref)
    h = gcn(h, w3_ref, b3_ref)

    # Global mean pool over each graph's nodes as a matmul: [Bh, M] @ [M, HP].
    g = jnp.dot(pmat, h, preferred_element_type=f32)

    # Linear(512) -> ReLU-MLP(1024 -> OP), Bh-row GEMMs, fused in the same call.
    c = jnp.dot(g.astype(bf16), wp_ref[...], preferred_element_type=f32) + bp_ref[...]
    m = jnp.dot(c.astype(bf16), wm1_ref[...], preferred_element_type=f32) + bm1_ref[...]
    m = jnp.maximum(m, 0.0)
    o = jnp.dot(m.astype(bf16), wm2_ref[...], preferred_element_type=f32) + bm2_ref[...]
    o_ref[0] = o.astype(o_ref.dtype)


@functools.partial(jax.jit, static_argnames=("pred_size",))
def g2g_forward_batched(a_norm, x, params, pred_size):
    """a_norm: [B, N, N] f32, x: [B, N, F] f32. Returns [B, pred, pred, 2] f32."""
    (w1, b1), (w2, b2), (w3, b3) = params["conv1"], params["conv2"], params["conv3"]
    (wp, bp) = params["global_pooling"]
    (wm1, bm1), (wm2, bm2) = params["mlp1"], params["mlp2"]

    B, N, F = x.shape
    FP, HP = w1.shape                  # padded feature / hidden dims (8, 128)
    D1, D2 = wm1.shape                 # 512, 1024
    OP = wm2.shape[1]                  # lane-padded output dim (256)
    out_dim = pred_size * pred_size * 2

    bf16 = jnp.bfloat16

    # Two half-batch blocks when possible so both v7x TensorCores are used;
    # a single block otherwise (v5e/v6e have 1 TC, so extra steps are pure cost).
    G = 2 if (B % 2 == 0 and B >= 2) else 1
    Bh = B // G
    M = Bh * N

    # Stacked node features, padded F -> FP with zeros, cast to bf16 once here.
    x_blk = jnp.pad(x, ((0, 0), (0, 0), (0, FP - F))).reshape(G, M, FP).astype(bf16)

    # Exactly block-diagonal A_norm per half-batch (off-diagonal blocks are exact 0s,
    # so graphs cannot leak into each other).
    a_g = a_norm.reshape(G, Bh, N, N)
    eye = jnp.eye(Bh, dtype=a_norm.dtype)
    a_blk = jnp.einsum("ij,girc->girjc", eye, a_g).reshape(G, M, M).astype(bf16)

    # Mean pool as a matmul: P[b, b*N + r] = 1/N (true per-graph node count; all
    # node rows here are real nodes, no padding rows).
    p_one = jnp.kron(jnp.eye(Bh, dtype=jnp.float32),
                     jnp.full((1, N), 1.0 / N, jnp.float32))
    p_blk = jnp.broadcast_to(p_one, (G, Bh, M)).astype(bf16)

    flops = G * (2 * M * FP * HP + 2 * 2 * M * HP * HP          # feature transforms
                 + 3 * 2 * M * M * HP                           # aggregations
                 + 2 * Bh * M * HP                              # mean pool
                 + 2 * Bh * (HP * D1 + D1 * D2 + D2 * OP))      # linear + MLP
    bytes_accessed = ((a_blk.size + x_blk.size + p_blk.size) * 2
                      + (w1.size + w2.size + w3.size
                         + wp.size + wm1.size + wm2.size) * 2
                      + (b1.size + b2.size + b3.size
                         + bp.size + bm1.size + bm2.size) * 4
                      + B * OP * 4)

    inv2 = lambda g: (0, 0)   # grid-invariant 2-D block: DMA'd once, stays in VMEM

    out_blk = pl.pallas_call(
        _g2g_fused_kernel,
        out_shape=jax.ShapeDtypeStruct((G, Bh, OP), jnp.float32),
        grid_spec=pltpu.PrefetchScalarGridSpec(
            num_scalar_prefetch=0,
            grid=(G,),
            in_specs=[
                pl.BlockSpec((1, M, M), lambda g: (g, 0, 0)),    # A_norm (per half)
                pl.BlockSpec((1, M, FP), lambda g: (g, 0, 0)),   # X (per half)
                pl.BlockSpec((1, Bh, M), lambda g: (g, 0, 0)),   # pool matrix
                pl.BlockSpec((FP, HP), inv2),                    # conv1 W
                pl.BlockSpec((1, HP), inv2),                     # conv1 b
                pl.BlockSpec((HP, HP), inv2),                    # conv2 W
                pl.BlockSpec((1, HP), inv2),                     # conv2 b
                pl.BlockSpec((HP, HP), inv2),                    # conv3 W
                pl.BlockSpec((1, HP), inv2),                     # conv3 b
                pl.BlockSpec((HP, D1), inv2),                    # global_pooling W
                pl.BlockSpec((1, D1), inv2),                     # global_pooling b
                pl.BlockSpec((D1, D2), inv2),                    # mlp1 W
                pl.BlockSpec((1, D2), inv2),                     # mlp1 b
                pl.BlockSpec((D2, OP), inv2),                    # mlp2 W
                pl.BlockSpec((1, OP), inv2),                     # mlp2 b
            ],
            out_specs=pl.BlockSpec((1, Bh, OP), lambda g: (g, 0, 0)),
        ),
        compiler_params=pltpu.CompilerParams(
            dimension_semantics=("parallel",),   # 2 half-batches -> both v7x TCs
        ),
        cost_estimate=pl.CostEstimate(
            flops=flops, transcendentals=0, bytes_accessed=bytes_accessed),
    )(a_blk, x_blk, p_blk, w1, b1, w2, b2, w3, b3, wp, bp, wm1, bm1, wm2, bm2)

    out = out_blk.reshape(B, OP)[:, :out_dim]     # drop lane padding (242 of 256)
    return out.reshape(B, pred_size, pred_size, 2)


# ----------------------------------------------------------------------------
# Glue: dense normalized adjacency, parameter init, padding/casting, reference.
# ----------------------------------------------------------------------------
def gcn_normalized_adjacency(edge_index, num_nodes):
    """A_norm[i, j] = d_i^-1/2 * d_j^-1/2 for edge j->i (incl. self loops), as in GCNConv."""
    # TODO(synk): sparse COO scatter has no clean in-kernel Pallas equivalent; the
    # densification happens in this plain-JAX glue and the kernel consumes dense A_norm.
    src = jnp.concatenate([edge_index[0], jnp.arange(num_nodes, dtype=edge_index.dtype)])
    dst = jnp.concatenate([edge_index[1], jnp.arange(num_nodes, dtype=edge_index.dtype)])
    a_hat = jnp.zeros((num_nodes, num_nodes), jnp.float32).at[dst, src].add(1.0)
    deg = a_hat.sum(axis=1)
    d_inv_sqrt = jnp.where(deg > 0, jax.lax.rsqrt(jnp.maximum(deg, 1e-12)), 0.0)
    return d_inv_sqrt[:, None] * a_hat * d_inv_sqrt[None, :]


def init_params(key, node_feature_dim=2, hidden_dim=64, pred_size=11):
    """Raw f32 parameters at true (unpadded) dims: name -> (W [din, dout], b [1, dout])."""
    out_dim = pred_size * pred_size * 2
    dims = {
        "conv1": (node_feature_dim, hidden_dim),
        "conv2": (hidden_dim, hidden_dim),
        "conv3": (hidden_dim, hidden_dim),
        "global_pooling": (hidden_dim, 512),
        "mlp1": (512, 1024),
        "mlp2": (1024, out_dim),
    }
    params = {}
    keys = jax.random.split(key, len(dims))
    for k, (name, (din, dout)) in zip(keys, dims.items()):
        kw, kb = jax.random.split(k)
        scale = 1.0 / jnp.sqrt(jnp.float32(din))
        w = jax.random.uniform(kw, (din, dout), jnp.float32, -scale, scale)
        b = jax.random.uniform(kb, (1, dout), jnp.float32, -scale, scale)
        params[name] = (w, b)
    return params


def prepare_params(raw):
    """Zero-pad weights/biases to TPU-friendly dims; weights -> bf16, biases stay f32.

    Padded rows/cols are zero, so padded lanes of every activation provably stay zero
    through relu and aggregation and are sliced off in the wrapper.
    """
    hidden_pad = LANE
    out_pad = _round_up(raw["mlp2"][0].shape[1], LANE)
    targets = {
        "conv1": (F_PAD, hidden_pad),           # feature dim only padded 2 -> 8
        "conv2": (hidden_pad, hidden_pad),
        "conv3": (hidden_pad, hidden_pad),
        "global_pooling": (hidden_pad, raw["global_pooling"][0].shape[1]),
        "mlp1": raw["mlp1"][0].shape,
        "mlp2": (raw["mlp2"][0].shape[0], out_pad),
    }
    params = {}
    for name, (w, b) in raw.items():
        rp, cp = targets[name]
        wp = jnp.pad(w, ((0, rp - w.shape[0]), (0, cp - w.shape[1]))).astype(jnp.bfloat16)
        bp = jnp.pad(b, ((0, 0), (0, cp - b.shape[1])))
        params[name] = (wp, bp)
    return params


def g2g_reference(a_norm, x, raw_params, pred_size):
    """Pure-JAX f32 reference matching the PyTorch module semantics (per graph)."""
    def one_graph(a, xg):
        h = xg
        for name in ("conv1", "conv2", "conv3"):
            w, b = raw_params[name]
            h = jnp.maximum(a @ (h @ w) + b, 0.0)
        g = h.mean(axis=0, keepdims=True)
        wp, bp = raw_params["global_pooling"]
        wm1, bm1 = raw_params["mlp1"]
        wm2, bm2 = raw_params["mlp2"]
        c = g @ wp + bp
        m = jnp.maximum(c @ wm1 + bm1, 0.0)
        o = m @ wm2 + bm2
        return o.reshape(pred_size, pred_size, 2)
    return jax.vmap(one_graph)(a_norm, x)


# ----------------------------------------------------------------------------
# Main
# ----------------------------------------------------------------------------
if __name__ == "__main__":
    key = jax.random.PRNGKey(0)
    k_x, k_p = jax.random.split(key)

    batch = 8
    num_nodes = 16
    node_feature_dim = 2
    hidden_dim = 64
    pred_size = 11

    # Node features [batch, num_nodes, node_feature_dim]
    x = jax.random.normal(k_x, (batch, num_nodes, node_feature_dim), jnp.float32)

    # Per-graph edge_index [2, num_edges]: bidirectional ring + a per-graph chord.
    idx = jnp.arange(num_nodes, dtype=jnp.int32)
    nxt = (idx + 1) % num_nodes
    a_list = []
    for g in range(batch):
        chord = (idx + 2 + g) % num_nodes
        edge_index = jnp.stack([jnp.concatenate([idx, nxt, idx, chord]),
                                jnp.concatenate([nxt, idx, chord, idx])], axis=0)
        a_list.append(gcn_normalized_adjacency(edge_index, num_nodes))
    a_norm = jnp.stack(a_list, axis=0)

    raw_params = init_params(k_p, node_feature_dim, hidden_dim, pred_size)
    params = prepare_params(raw_params)

    out = g2g_forward_batched(a_norm, x, params, pred_size)
    out = jax.block_until_ready(out)

    assert out.shape == (batch, pred_size, pred_size, 2), out.shape
    assert out.dtype == jnp.float32
    assert bool(jnp.all(jnp.isfinite(out)))

    # Check against the f32 reference (tolerance accounts for bf16 weights/activations).
    ref = g2g_reference(a_norm, x, raw_params, pred_size)
    assert bool(jnp.allclose(out, ref, rtol=1e-1, atol=1e-1))

    print("KERNEL_OK")
</pallas_src>

<mosaic_0001>
module attributes {stable_mosaic.version = 11 : i64} {
  func.func @_g2g_fused_kernel(%arg0: i32, %arg1: memref<1x64x64xbf16, #tpu.memory_space<vmem>>, %arg2: memref<1x64x8xbf16, #tpu.memory_space<vmem>>, %arg3: memref<1x4x64xbf16, #tpu.memory_space<vmem>>, %arg4: memref<8x128xbf16, #tpu.memory_space<vmem>>, %arg5: memref<1x128xf32, #tpu.memory_space<vmem>>, %arg6: memref<128x128xbf16, #tpu.memory_space<vmem>>, %arg7: memref<1x128xf32, #tpu.memory_space<vmem>>, %arg8: memref<128x128xbf16, #tpu.memory_space<vmem>>, %arg9: memref<1x128xf32, #tpu.memory_space<vmem>>, %arg10: memref<128x512xbf16, #tpu.memory_space<vmem>>, %arg11: memref<1x512xf32, #tpu.memory_space<vmem>>, %arg12: memref<512x1024xbf16, #tpu.memory_space<vmem>>, %arg13: memref<1x1024xf32, #tpu.memory_space<vmem>>, %arg14: memref<1024x256xbf16, #tpu.memory_space<vmem>>, %arg15: memref<1x256xf32, #tpu.memory_space<vmem>>, %arg16: memref<1x4x256xf32, #tpu.memory_space<vmem>>) attributes {dimension_semantics = [#tpu.dimension_semantics<parallel>], iteration_bounds = array<i64: 2>, scalar_prefetch = 0 : i64, scratch_operands = 0 : i64, tpu.core_type = #tpu.core_type<tc>, window_params = [{transform_indices = @transform_0, window_bounds = array<i64: 1, 64, 64>}, {transform_indices = @transform_1, window_bounds = array<i64: 1, 64, 8>}, {transform_indices = @transform_2, window_bounds = array<i64: 1, 4, 64>}, {pipeline_mode = #tpu.pipeline_mode<synchronous>, transform_indices = @transform_3, window_bounds = array<i64: 8, 128>}, {pipeline_mode = #tpu.pipeline_mode<synchronous>, transform_indices = @transform_4, window_bounds = array<i64: 1, 128>}, {pipeline_mode = #tpu.pipeline_mode<synchronous>, transform_indices = @transform_5, window_bounds = array<i64: 128, 128>}, {pipeline_mode = #tpu.pipeline_mode<synchronous>, transform_indices = @transform_6, window_bounds = array<i64: 1, 128>}, {pipeline_mode = #tpu.pipeline_mode<synchronous>, transform_indices = @transform_7, window_bounds = array<i64: 128, 128>}, {pipeline_mode = #tpu.pipeline_mode<synchronous>, transform_indices = @transform_8, window_bounds = array<i64: 1, 128>}, {pipeline_mode = #tpu.pipeline_mode<synchronous>, transform_indices = @transform_9, window_bounds = array<i64: 128, 512>}, {pipeline_mode = #tpu.pipeline_mode<synchronous>, transform_indices = @transform_10, window_bounds = array<i64: 1, 512>}, {pipeline_mode = #tpu.pipeline_mode<synchronous>, transform_indices = @transform_11, window_bounds = array<i64: 512, 1024>}, {pipeline_mode = #tpu.pipeline_mode<synchronous>, transform_indices = @transform_12, window_bounds = array<i64: 1, 1024>}, {pipeline_mode = #tpu.pipeline_mode<synchronous>, transform_indices = @transform_13, window_bounds = array<i64: 1024, 256>}, {pipeline_mode = #tpu.pipeline_mode<synchronous>, transform_indices = @transform_14, window_bounds = array<i64: 1, 256>}, {transform_indices = @transform_15, window_bounds = array<i64: 1, 4, 256>}]} {
    %c0 = arith.constant 0 : index
    %c0_0 = arith.constant 0 : index
    %c0_1 = arith.constant 0 : index
    %0 = vector.load %arg1[%c0, %c0_0, %c0_1] : memref<1x64x64xbf16, #tpu.memory_space<vmem>>, vector<1x64x64xbf16>
    %1 = vector.shape_cast %0 : vector<1x64x64xbf16> to vector<64x64xbf16>
    %c0_2 = arith.constant 0 : index
    %c0_3 = arith.constant 0 : index
    %c0_4 = arith.constant 0 : index
    %2 = vector.load %arg2[%c0_2, %c0_3, %c0_4] : memref<1x64x8xbf16, #tpu.memory_space<vmem>>, vector<1x64x8xbf16>
    %3 = vector.shape_cast %2 : vector<1x64x8xbf16> to vector<64x8xbf16>
    %c0_5 = arith.constant 0 : index
    %c0_6 = arith.constant 0 : index
    %c0_7 = arith.constant 0 : index
    %4 = vector.load %arg3[%c0_5, %c0_6, %c0_7] : memref<1x4x64xbf16, #tpu.memory_space<vmem>>, vector<1x4x64xbf16>
    %5 = vector.shape_cast %4 : vector<1x4x64xbf16> to vector<4x64xbf16>
    %c0_8 = arith.constant 0 : index
    %c0_9 = arith.constant 0 : index
    %6 = vector.load %arg4[%c0_8, %c0_9] : memref<8x128xbf16, #tpu.memory_space<vmem>>, vector<8x128xbf16>
    %cst = arith.constant dense<0.000000e+00> : vector<64x128xf32>
    %7 = tpu.matmul %3, %6, %cst {dimension_numbers = #tpu.dot_dimension_numbers<[1], [0], [0], [1], [0, 0, 1, 1], [], []>} : vector<64x8xbf16>, vector<8x128xbf16>, vector<64x128xf32> -> vector<64x128xf32>
    %8 = arith.truncf %7 : vector<64x128xf32> to vector<64x128xbf16>
    %cst_10 = arith.constant dense<0.000000e+00> : vector<64x128xf32>
    %9 = tpu.matmul %1, %8, %cst_10 {dimension_numbers = #tpu.dot_dimension_numbers<[1], [0], [0], [1], [0, 0, 1, 1], [], []>} : vector<64x64xbf16>, vector<64x128xbf16>, vector<64x128xf32> -> vector<64x128xf32>
    %c0_11 = arith.constant 0 : index
    %c0_12 = arith.constant 0 : index
    %10 = vector.load %arg5[%c0_11, %c0_12] : memref<1x128xf32, #tpu.memory_space<vmem>>, vector<1x128xf32>
    %11 = vector.broadcast %10 : vector<1x128xf32> to vector<64x128xf32>
    %12 = arith.addf %9, %11 : vector<64x128xf32>
    %cst_13 = arith.constant 0.000000e+00 : f32
    %13 = vector.broadcast %cst_13 : f32 to vector<64x128xf32>
    %14 = arith.maximumf %12, %13 : vector<64x128xf32>
    %15 = arith.truncf %14 : vector<64x128xf32> to vector<64x128xbf16>
    %c0_14 = arith.constant 0 : index
    %c0_15 = arith.constant 0 : index
    %16 = vector.load %arg6[%c0_14, %c0_15] : memref<128x128xbf16, #tpu.memory_space<vmem>>, vector<128x128xbf16>
    %cst_16 = arith.constant dense<0.000000e+00> : vector<64x128xf32>
    %17 = tpu.matmul %15, %16, %cst_16 {dimension_numbers = #tpu.dot_dimension_numbers<[1], [0], [0], [1], [0, 0, 1, 1], [], []>} : vector<64x128xbf16>, vector<128x128xbf16>, vector<64x128xf32> -> vector<64x128xf32>
    %18 = arith.truncf %17 : vector<64x128xf32> to vector<64x128xbf16>
    %cst_17 = arith.constant dense<0.000000e+00> : vector<64x128xf32>
    %19 = tpu.matmul %1, %18, %cst_17 {dimension_numbers = #tpu.dot_dimension_numbers<[1], [0], [0], [1], [0, 0, 1, 1], [], []>} : vector<64x64xbf16>, vector<64x128xbf16>, vector<64x128xf32> -> vector<64x128xf32>
    %c0_18 = arith.constant 0 : index
    %c0_19 = arith.constant 0 : index
    %20 = vector.load %arg7[%c0_18, %c0_19] : memref<1x128xf32, #tpu.memory_space<vmem>>, vector<1x128xf32>
    %21 = vector.broadcast %20 : vector<1x128xf32> to vector<64x128xf32>
    %22 = arith.addf %19, %21 : vector<64x128xf32>
    %cst_20 = arith.constant 0.000000e+00 : f32
    %23 = vector.broadcast %cst_20 : f32 to vector<64x128xf32>
    %24 = arith.maximumf %22, %23 : vector<64x128xf32>
    %25 = arith.truncf %24 : vector<64x128xf32> to vector<64x128xbf16>
    %c0_21 = arith.constant 0 : index
    %c0_22 = arith.constant 0 : index
    %26 = vector.load %arg8[%c0_21, %c0_22] : memref<128x128xbf16, #tpu.memory_space<vmem>>, vector<128x128xbf16>
    %cst_23 = arith.constant dense<0.000000e+00> : vector<64x128xf32>
    %27 = tpu.matmul %25, %26, %cst_23 {dimension_numbers = #tpu.dot_dimension_numbers<[1], [0], [0], [1], [0, 0, 1, 1], [], []>} : vector<64x128xbf16>, vector<128x128xbf16>, vector<64x128xf32> -> vector<64x128xf32>
    %28 = arith.truncf %27 : vector<64x128xf32> to vector<64x128xbf16>
    %cst_24 = arith.constant dense<0.000000e+00> : vector<64x128xf32>
    %29 = tpu.matmul %1, %28, %cst_24 {dimension_numbers = #tpu.dot_dimension_numbers<[1], [0], [0], [1], [0, 0, 1, 1], [], []>} : vector<64x64xbf16>, vector<64x128xbf16>, vector<64x128xf32> -> vector<64x128xf32>
    %c0_25 = arith.constant 0 : index
    %c0_26 = arith.constant 0 : index
    %30 = vector.load %arg9[%c0_25, %c0_26] : memref<1x128xf32, #tpu.memory_space<vmem>>, vector<1x128xf32>
    %31 = vector.broadcast %30 : vector<1x128xf32> to vector<64x128xf32>
    %32 = arith.addf %29, %31 : vector<64x128xf32>
    %cst_27 = arith.constant 0.000000e+00 : f32
    %33 = vector.broadcast %cst_27 : f32 to vector<64x128xf32>
    %34 = arith.maximumf %32, %33 : vector<64x128xf32>
    %35 = arith.truncf %34 : vector<64x128xf32> to vector<64x128xbf16>
    %cst_28 = arith.constant dense<0.000000e+00> : vector<4x128xf32>
    %36 = tpu.matmul %5, %35, %cst_28 {dimension_numbers = #tpu.dot_dimension_numbers<[1], [0], [0], [1], [0, 0, 1, 1], [], []>} : vector<4x64xbf16>, vector<64x128xbf16>, vector<4x128xf32> -> vector<4x128xf32>
    %37 = arith.truncf %36 : vector<4x128xf32> to vector<4x128xbf16>
    %c0_29 = arith.constant 0 : index
    %c0_30 = arith.constant 0 : index
    %38 = vector.load %arg10[%c0_29, %c0_30] : memref<128x512xbf16, #tpu.memory_space<vmem>>, vector<128x512xbf16>
    %cst_31 = arith.constant dense<0.000000e+00> : vector<4x512xf32>
    %39 = tpu.matmul %37, %38, %cst_31 {dimension_numbers = #tpu.dot_dimension_numbers<[1], [0], [0], [1], [0, 0, 1, 1], [], []>} : vector<4x128xbf16>, vector<128x512xbf16>, vector<4x512xf32> -> vector<4x512xf32>
    %c0_32 = arith.constant 0 : index
    %c0_33 = arith.constant 0 : index
    %40 = vector.load %arg11[%c0_32, %c0_33] : memref<1x512xf32, #tpu.memory_space<vmem>>, vector<1x512xf32>
    %41 = vector.broadcast %40 : vector<1x512xf32> to vector<4x512xf32>
    %42 = arith.addf %39, %41 : vector<4x512xf32>
    %43 = arith.truncf %42 : vector<4x512xf32> to vector<4x512xbf16>
    %c0_34 = arith.constant 0 : index
    %c0_35 = arith.constant 0 : index
    %44 = vector.load %arg12[%c0_34, %c0_35] : memref<512x1024xbf16, #tpu.memory_space<vmem>>, vector<512x1024xbf16>
    %cst_36 = arith.constant dense<0.000000e+00> : vector<4x1024xf32>
    %45 = tpu.matmul %43, %44, %cst_36 {dimension_numbers = #tpu.dot_dimension_numbers<[1], [0], [0], [1], [0, 0, 1, 1], [], []>} : vector<4x512xbf16>, vector<512x1024xbf16>, vector<4x1024xf32> -> vector<4x1024xf32>
    %c0_37 = arith.constant 0 : index
    %c0_38 = arith.constant 0 : index
    %46 = vector.load %arg13[%c0_37, %c0_38] : memref<1x1024xf32, #tpu.memory_space<vmem>>, vector<1x1024xf32>
    %47 = vector.broadcast %46 : vector<1x1024xf32> to vector<4x1024xf32>
    %48 = arith.addf %45, %47 : vector<4x1024xf32>
    %cst_39 = arith.constant 0.000000e+00 : f32
    %49 = vector.broadcast %cst_39 : f32 to vector<4x1024xf32>
    %50 = arith.maximumf %48, %49 : vector<4x1024xf32>
    %51 = arith.truncf %50 : vector<4x1024xf32> to vector<4x1024xbf16>
    %c0_40 = arith.constant 0 : index
    %c0_41 = arith.constant 0 : index
    %52 = vector.load %arg14[%c0_40, %c0_41] : memref<1024x256xbf16, #tpu.memory_space<vmem>>, vector<1024x256xbf16>
    %cst_42 = arith.constant dense<0.000000e+00> : vector<4x256xf32>
    %53 = tpu.matmul %51, %52, %cst_42 {dimension_numbers = #tpu.dot_dimension_numbers<[1], [0], [0], [1], [0, 0, 1, 1], [], []>} : vector<4x1024xbf16>, vector<1024x256xbf16>, vector<4x256xf32> -> vector<4x256xf32>
    %c0_43 = arith.constant 0 : index
    %c0_44 = arith.constant 0 : index
    %54 = vector.load %arg15[%c0_43, %c0_44] : memref<1x256xf32, #tpu.memory_space<vmem>>, vector<1x256xf32>
    %55 = vector.broadcast %54 : vector<1x256xf32> to vector<4x256xf32>
    %56 = arith.addf %53, %55 : vector<4x256xf32>
    %c0_45 = arith.constant 0 : index
    %c0_46 = arith.constant 0 : index
    %c0_47 = arith.constant 0 : index
    %57 = vector.load %arg16[%c0_45, %c0_46, %c0_47] : memref<1x4x256xf32, #tpu.memory_space<vmem>>, vector<1x4x256xf32>
    %58 = vector.shape_cast %57 : vector<1x4x256xf32> to vector<4x256xf32>
    %59 = vector.shape_cast %56 : vector<4x256xf32> to vector<1x4x256xf32>
    tpu.vector_store %arg16[%c0_45, %c0_46, %c0_47], %59 {strides = array<i32>} : memref<1x4x256xf32, #tpu.memory_space<vmem>>, vector<1x4x256xf32>,
    return
  }
  func.func @transform_0(%arg0: i32) -> (i32, i32, i32) {
    %c0_i32 = arith.constant 0 : i32
    %c0_i32_0 = arith.constant 0 : i32
    %c0_i32_1 = arith.constant 0 : i32
    return %arg0, %c0_i32, %c0_i32_0 : i32, i32, i32
  }
  func.func @transform_1(%arg0: i32) -> (i32, i32, i32) {
    %c0_i32 = arith.constant 0 : i32
    %c0_i32_0 = arith.constant 0 : i32
    %c0_i32_1 = arith.constant 0 : i32
    return %arg0, %c0_i32, %c0_i32_0 : i32, i32, i32
  }
  func.func @transform_2(%arg0: i32) -> (i32, i32, i32) {
    %c0_i32 = arith.constant 0 : i32
    %c0_i32_0 = arith.constant 0 : i32
    %c0_i32_1 = arith.constant 0 : i32
    return %arg0, %c0_i32, %c0_i32_0 : i32, i32, i32
  }
  func.func @transform_3(%arg0: i32) -> (i32, i32) {
    %c0_i32 = arith.constant 0 : i32
    %c0_i32_0 = arith.constant 0 : i32
    %c0_i32_1 = arith.constant 0 : i32
    return %c0_i32, %c0_i32_0 : i32, i32
  }
  func.func @transform_4(%arg0: i32) -> (i32, i32) {
    %c0_i32 = arith.constant 0 : i32
    %c0_i32_0 = arith.constant 0 : i32
    %c0_i32_1 = arith.constant 0 : i32
    return %c0_i32, %c0_i32_0 : i32, i32
  }
  func.func @transform_5(%arg0: i32) -> (i32, i32) {
    %c0_i32 = arith.constant 0 : i32
    %c0_i32_0 = arith.constant 0 : i32
    %c0_i32_1 = arith.constant 0 : i32
    return %c0_i32, %c0_i32_0 : i32, i32
  }
  func.func @transform_6(%arg0: i32) -> (i32, i32) {
    %c0_i32 = arith.constant 0 : i32
    %c0_i32_0 = arith.constant 0 : i32
    %c0_i32_1 = arith.constant 0 : i32
    return %c0_i32, %c0_i32_0 : i32, i32
  }
  func.func @transform_7(%arg0: i32) -> (i32, i32) {
    %c0_i32 = arith.constant 0 : i32
    %c0_i32_0 = arith.constant 0 : i32
    %c0_i32_1 = arith.constant 0 : i32
    return %c0_i32, %c0_i32_0 : i32, i32
  }
  func.func @transform_8(%arg0: i32) -> (i32, i32) {
    %c0_i32 = arith.constant 0 : i32
    %c0_i32_0 = arith.constant 0 : i32
    %c0_i32_1 = arith.constant 0 : i32
    return %c0_i32, %c0_i32_0 : i32, i32
  }
  func.func @transform_9(%arg0: i32) -> (i32, i32) {
    %c0_i32 = arith.constant 0 : i32
    %c0_i32_0 = arith.constant 0 : i32
    %c0_i32_1 = arith.constant 0 : i32
    return %c0_i32, %c0_i32_0 : i32, i32
  }
  func.func @transform_10(%arg0: i32) -> (i32, i32) {
    %c0_i32 = arith.constant 0 : i32
    %c0_i32_0 = arith.constant 0 : i32
    %c0_i32_1 = arith.constant 0 : i32
    return %c0_i32, %c0_i32_0 : i32, i32
  }
  func.func @transform_11(%arg0: i32) -> (i32, i32) {
    %c0_i32 = arith.constant 0 : i32
    %c0_i32_0 = arith.constant 0 : i32
    %c0_i32_1 = arith.constant 0 : i32
    return %c0_i32, %c0_i32_0 : i32, i32
  }
  func.func @transform_12(%arg0: i32) -> (i32, i32) {
    %c0_i32 = arith.constant 0 : i32
    %c0_i32_0 = arith.constant 0 : i32
    %c0_i32_1 = arith.constant 0 : i32
    return %c0_i32, %c0_i32_0 : i32, i32
  }
  func.func @transform_13(%arg0: i32) -> (i32, i32) {
    %c0_i32 = arith.constant 0 : i32
    %c0_i32_0 = arith.constant 0 : i32
    %c0_i32_1 = arith.constant 0 : i32
    return %c0_i32, %c0_i32_0 : i32, i32
  }
  func.func @transform_14(%arg0: i32) -> (i32, i32) {
    %c0_i32 = arith.constant 0 : i32
    %c0_i32_0 = arith.constant 0 : i32
    %c0_i32_1 = arith.constant 0 : i32
    return %c0_i32, %c0_i32_0 : i32, i32
  }
  func.func @transform_15(%arg0: i32) -> (i32, i32, i32) {
    %c0_i32 = arith.constant 0 : i32
    %c0_i32_0 = arith.constant 0 : i32
    %c0_i32_1 = arith.constant 0 : i32
    return %arg0, %c0_i32, %c0_i32_0 : i32, i32, i32
  }
}

</mosaic_0001>

<bundles_post_ra>
// kernel: g2g_forward_batched.1
= control target key start
LH: loop header
LB: loop body
LE: loop exit
PB: predicated region body
PF: predicated region fallthrough
CT: control target
= control target key end

     0   :  { %s6101_s0 = inlined_call_operand.vmem [shape: bf16[2,64,64], index: 0, kind: input, shape index: {}]   ;;  %s6102_s1 = inlined_call_operand.vmem [shape: bf16[2,64,8], index: 1, kind: input, shape index: {}]   ;;  %s6103_s2 = inlined_call_operand.vmem [shape: bf16[2,4,64], index: 2, kind: input, shape index: {}]   ;;  %s6104_s3 = inlined_call_operand.vmem [shape: bf16[8,128], index: 3, kind: input, shape index: {}]   ;;  %s6105_s4 = inlined_call_operand.vmem [shape: f32[1,128], index: 4, kind: input, shape index: {}]   ;;  %s6106_s5 = inlined_call_operand.vmem [shape: bf16[128,128], index: 5, kind: input, shape index: {}]   ;;  %s6107_s6 = inlined_call_operand.vmem [shape: f32[1,128], index: 6, kind: input, shape index: {}]   ;;  %s6108_s7 = inlined_call_operand.vmem [shape: bf16[128,128], index: 7, kind: input, shape index: {}]   ;;  %s6109_s8 = inlined_call_operand.vmem [shape: f32[1,128], index: 8, kind: input, shape index: {}]   ;;  %s6110_s9 = inlined_call_operand.vmem [shape: bf16[128,512], index: 9, kind: input, shape index: {}]   ;;  %s6111_s10 = inlined_call_operand.vmem [shape: f32[1,512], index: 10, kind: input, shape index: {}]   ;;  %s6112_s11 = inlined_call_operand.hbm [shape: bf16[512,1024], index: 11, kind: input, shape index: {}]   ;;  %s6113_s12 = inlined_call_operand.vmem [shape: f32[1,1024], index: 12, kind: input, shape index: {}]   ;;  %s6114_s13 = inlined_call_operand.hbm [shape: bf16[1024,256], index: 13, kind: input, shape index: {}]   ;;  %s6115_s14 = inlined_call_operand.vmem [shape: f32[1,256], index: 14, kind: input, shape index: {}]   ;;  %s6116_s15 = inlined_call_operand.vmem [shape: f32[2,4,256], index: 15, kind: output, shape index: {}]  }
   0x1   :  { %6120 = sst [smem:[#allocation9_spill]] %s6116_s15 }
   0x2   :  { %20 = vsyncpa [#allocation3], 0 }
   0x3   :  { %21 = vsyncpa [#allocation5], 0  ;;  %s5711_s18 = smov 0  }
   0x4 LB: > { %6121 = sst [smem:[#allocation8_spill]] %s5620_s18  ;;  %s5622_s19 = smov [#allocation2]   ;;  %s5620_s18 = sphi %s5711_s18, %s27_s18  }
   0x5   : > { %s424_s20 = sshll.u32 %s5622_s19, 4  ;;  %s5717_s21 = sadd.s32 4294967295, %s5620_s18   ;;  %s425_s20 = int_to_ptr.vmem [resolvable:$true] %s424_s20 }
   0x6   : > { %p4556_p0 = scmp.ge.s32.totalorder %s5620_s18, 1  ;;  %p388_p1 = scmp.lt.s32.totalorder %s5620_s18, 3 }
   0x7   : > { %p6117_p3 = scmp.eq.s32.totalorder %s5717_s21, 0  ;;  %s5623_s23 = smov [#allocation4]  }
   0x8   : > { %p5721_p2 = pnand %p4556_p0, %p388_p1  ;;  %s440_s24 = sshll.u32 %s5623_s23, 4  ;;  %s5734_s24 = int_to_ptr.vmem [resolvable:$true] %s440_s24 }
   0x9   : > { %s5550_s28 = scalar_lea.hbm %s6112_s11, 32768 }
   0xa   : > { %s6122_s22 = scalar_select %p5721_p2, 1, 0 }
   0xb   : > { %p5258_p4 = pneg %p5721_p2  ;;  %p5551_p6 = scmp.ne.s32.totalorder %s6112_s11, %s5550_s28 }
   0xc   : > { %p5557_p10 = scmp.lt.u32.totalorder %s5550_s28, %s6112_s11 }
   0xd   : > { %p5730_p5 = pnand %p6117_p3, %p5258_p4 }
   0xf   : > { %p5552_p7 = pneg %p5730_p5 }
  0x11   : > { %p5553_p8 = pnand %p5552_p7, %p5551_p6 }
  0x13   : > { %p5554_p9 = pneg %p5553_p8 }
  0x15   : > { %p5559_p11 = pnand %p5557_p10, %p5554_p9 }
  0x17   : > { %5562 = shalt.err (!%p5559_p11)
}
  0x18   : > { %s5563_s19 = scalar_lea.vmem %s425_s20, 32768  ;;  %p5571_p1 = scmp.lt.s32.totalorder %s425_s20, %s425_s20 }
  0x19   : > { %p5564_p12 = scmp.ne.s32.totalorder %s425_s20, %s5563_s19  ;;  %p5572_p4 = scmp.lt.s32.totalorder %s5563_s19, %s5563_s19 }
  0x1b   : > { %p5566_p13 = pnand %p5564_p12, %p5552_p7  ;;  %p5573_p3 = por %p5572_p4, %p5571_p1 }
  0x1d   : > { %p5567_p0 = pneg %p5566_p13 }
  0x1f   : > { %p5574_p2 = pnand %p5573_p3, %p5567_p0 }
  0x21   : > { %5577 = shalt.err (!%p5574_p2)
}
  0x22   : > { %s5624_s23 = smov 512   ;;  %s5625_s26 = smov 32  }
  0x23   : > { %5261 = dma.hbm_to_vmem [thread:$0]  (!%p5730_p5), %s6112_s11, 32768, %s425_s20, [#allocation3], %s5624_s23, %s5624_s23, %s5625_s26  }
  0x24   : > { %s5578_s16 = scalar_lea.hbm %s6114_s13, 16384 }
  0x25   : > { %p5579_p6 = scmp.ne.s32.totalorder %s6114_s13, %s5578_s16  ;;  %p5585_p8 = scmp.lt.u32.totalorder %s5578_s16, %s6114_s13 }
  0x27   : > { %p5581_p2 = pnand %p5579_p6, %p5552_p7 }
  0x29   : > { %p5582_p3 = pneg %p5581_p2 }
  0x2b   : > { %p5587_p9 = pnand %p5585_p8, %p5582_p3 }
  0x2d   : > { %5590 = shalt.err (!%p5587_p9)
}
  0x2e   : > { %s5591_s20 = scalar_lea.vmem %s5734_s24, 16384  ;;  %p5599_p13 = scmp.lt.s32.totalorder %s5734_s24, %s5734_s24 }
  0x2f   : > { %p5592_p10 = scmp.ne.s32.totalorder %s5734_s24, %s5591_s20  ;;  %p5600_p0 = scmp.lt.s32.totalorder %s5591_s20, %s5591_s20 }
  0x31   : > { %p5594_p11 = pnand %p5592_p10, %p5552_p7  ;;  %p5601_p1 = por %p5600_p0, %p5599_p13 }
  0x33   : > { %p5595_p12 = pneg %p5594_p11 }
  0x35   : > { %p5602_p4 = pnand %p5601_p1, %p5595_p12 }
  0x37   : > { %5605 = shalt.err (!%p5602_p4)
}
  0x38   : > { %s5626_s15 = smov 128   ;;  %s5627_s18 = smov 8  }
  0x39   : > { %5264 = dma.hbm_to_vmem [thread:$0]  (!%p5730_p5), %s6114_s13, 16384, %s5734_s24, [#allocation5], %s5626_s15, %s5626_s15, %s5627_s18  }
  0x3a   : > { %p6124_p6 = scmp.ne.s32.totalorder %s6122_s22, 0 }
  0x3b   : > { %p6125_p7 = scmp.eq.s32.totalorder (!%p6124_p6), %s5717_s21, 0 }
  0x3c   : > { %482 = sbr.rel (%p6124_p6) target bundleno = 2648 (0xa58), region = 80 }
  0x43   : > { %5611 = dma.done.wait (%p6125_p7), [#allocation3], 32768   ;;  %p6126_p2 = pmov %p6125_p7 }
  0x45   : > { %5613 = vsyncadd (%p6126_p2), [#allocation3], 4294934528  ;;  %p6127_p3 = pmov %p6126_p2 }
  0x46   : > { %p6128_p8 = pmov %p6126_p2 }
  0x47   : > { %5615 = dma.done.wait (%p6127_p3), [#allocation5], 16384  }
  0x48   : > { %5617 = vsyncadd (%p6128_p8), [#allocation5], 4294950912  ;;  %p543_p9 = scmp.lt.s32.totalorder %s5717_s21, 1  ;;  %vm614_vm0 = vcmask 1043456   ;;  %vm601_vm1 = vcmask 64512   ;;  %vm714_vm2 = vcmask 523264  }
  0x49   : > { %v580_v0 = vld [vmem:[%s6104_s3] sm:$0xf]  ;;  %v5295_v8 = vld [vmem:[%s6106_s5 + $0x8] sm:$0xff]   ;;  %v5296_v9 = vld [vmem:[%s6106_s5 + $0x10] sm:$0xff]   ;;  %vm5629_vm3 = vmmov 0  }
  0x4a   : > { %s6132_s21 = smov (!%p543_p9, %s5717_s21), 1  ;;  %5249 = vmatprep.subr.msk.bf16.mxu0 %vm614_vm0, %v580_v0  ;;  %v616_v1 = vsel %vm614_vm0, %v580_v0, 0  ;;  %v5294_v7 = vld [vmem:[%s6106_s5] sm:$0xff]   ;;  %v5297_v10 = vld [vmem:[%s6106_s5 + $0x18] sm:$0xff]   ;;  %v5299_v12 = vld [vmem:[%s6106_s5 + $0x28] sm:$0xff]  }
  0x4b   : > { %s5032_s22 = sshll.u32 %s6132_s21, 5  ;;  %5094 = vmatpush3.bf16.msra.mxu0 %v616_v1  ;;  %v5298_v11 = vld [vmem:[%s6106_s5 + $0x20] sm:$0xff]   ;;  %v5300_v28 = vld [vmem:[%s6106_s5 + $0x30] sm:$0xff]   ;;  %v5301_v29 = vld [vmem:[%s6106_s5 + $0x38] sm:$0xff]   ;;  %s4567_s28 = sshll.u32 %s6132_s21, 1 }
  0x4c   : > { %s552_s27 = scalar_lea.vmem %s6102_s1, %s5032_s22  ;;  %s5807_s17 = scalar_lea.vmem %s6101_s0, %s5032_s22  ;;  %5119 = vmatprep.subr.bf16.mxu0 %v5294_v7  ;;  %v4578_v30 = vld [vmem:[%s6105_s4] ss:$0 sm:$0xff] }
  0x4d   : > { %v5286_v2 = vld [vmem:[%s552_s27] sm:$0xff]   ;;  %v5287_v3 = vld [vmem:[%s552_s27 + $0x8] sm:$0xff]   ;;  %v5288_v4 = vld [vmem:[%s552_s27 + $0x10] sm:$0xff]   ;;  %s556_s16 = scalar_lea.vmem %s6103_s2, %s4567_s28  ;;  %s5034_s24 = sshll.u32 %s6132_s21, 3 }
  0x4e   : > { %5095 = vmatprep.mubr.msk.bf16.mxu0 %vm601_vm1, %v5286_v2  ;;  %v5289_v5 = vld [vmem:[%s552_s27 + $0x18] sm:$0xff]   ;;  %v5810_v6 = vld [vmem:[%s5807_s17] sm:$0xff]   ;;  %v5833_v25 = vld [vmem:[%s5807_s17 + $0x8] sm:$0xff]   ;;  %s6129_s28 = sld [smem:[#allocation9_spill]] }
  0x4f   : > { %5096 = vmatmul.mubr.msk.bf16.vlgmr.msra.gmra.mrb[0].mxu0 %vm601_vm1, %v5287_v3  ;;  %5111 = vmatprep.mubr.msk.bf16.mxu1 %vm714_vm2, %v5810_v6  ;;  %v5836_v26 = vld [vmem:[%s5807_s17 + $0x10] sm:$0xff]   ;;  %v5843_v27 = vld [vmem:[%s5807_s17 + $0x18] sm:$0xff]  }
  0x50   : > { %5099 = vmatprep.mubr.msk.bf16.mxu0 %vm601_vm1, %v5288_v4  ;;  %5120 = vmatpush3.bf16.msra.mxu0 %v5294_v7 }
  0x51   : > { %5121 = vmatprep.subr.bf16.mxu0 %v5295_v8 }
  0x54   : > { %5122 = vmatpush3.bf16.msra.mxu0 %v5295_v8  ;;  %v5303_v8 = vld [vmem:[%s6108_s7 + $0x8] sm:$0xff]   ;;  %s561_s29 = scalar_lea.vmem %s6129_s28, %s5034_s24 }
  0x55   : > { %5123 = vmatprep.subr.bf16.mxu0 %v5296_v9 }
  0x57   : > { %5100 = vmatmul.mubr.msk.bf16.gmra.mrb[4].mxu0 %vm601_vm1, %v5289_v5 }
  0x58   : > { %5124 = vmatpush3.bf16.msra.mxu0 %v5296_v9  ;;  %v5304_v9 = vld [vmem:[%s6108_s7 + $0x10] sm:$0xff]  }
  0x59   : > { %5125 = vmatprep.subr.bf16.mxu0 %v5297_v10 }
  0x5c   : > { %5126 = vmatpush3.bf16.msra.mxu0 %v5297_v10  ;;  %v5305_v10 = vld [vmem:[%s6108_s7 + $0x18] sm:$0xff]  }
  0x5d   : > { %5127 = vmatprep.subr.bf16.mxu0 %v5298_v11 }
  0x60   : > { %5128 = vmatpush3.bf16.msra.mxu0 %v5298_v11  ;;  %v5306_v11 = vld [vmem:[%s6108_s7 + $0x20] sm:$0xff]  }
  0x61   : > { %5129 = vmatprep.subr.bf16.mxu0 %v5299_v12 }
  0x64   : > { %5130 = vmatpush3.bf16.msra.mxu0 %v5299_v12  ;;  %v5307_v12 = vld [vmem:[%s6108_s7 + $0x28] sm:$0xff]  }
  0x65   : > { %5131 = vmatprep.subr.bf16.mxu0 %v5300_v28 }
  0x68   : > { %5132 = vmatpush3.bf16.msra.mxu0 %v5300_v28 }
  0x69   : > { %5133 = vmatprep.subr.bf16.mxu0 %v5301_v29 }
  0x6c   : > { %5134 = vmatpush3.bf16.msra.mxu0 %v5301_v29 }
 0x122   : > { %v5097_v13 = vpop.f32.mrb[0].mxu0 }
 0x123   : > { %v652_v14 = vpop.f32.mrb[1].mxu0 }
 0x124   : > { %v5098_v15 = vpop.f32.mrb[2].mxu0 }
 0x125   : > { %v684_v16 = vpack.c.bf16 %v5098_v15, %v5097_v13  ;;  %v655_v17 = vpop.f32.mrb[3].mxu0  ;;  %v5308_v13 = vld [vmem:[%s6108_s7 + $0x30] sm:$0xff]   ;;  %v4595_v15 = vld [vmem:[%s6107_s6] ss:$0 sm:$0xff] }
 0x126   : > { %v683_v18 = vpack.c.bf16 %v655_v17, %v652_v14  ;;  %v5309_v14 = vld [vmem:[%s6108_s7 + $0x38] sm:$0xff]  }
 0x128   : > { %5103 = vmatprep.subr.bf16.mxu1 %v683_v18 }
 0x129   : > { %5104 = vmatpush3.bf16.msra.mxu1 %v683_v18 }
 0x12a   : > { %v5101_v19 = vpop.f32.mrb[4].mxu0  ;;  %5105 = vmatprep.subr.bf16.mxu1 %v684_v16 }
 0x12b   : > { %v668_v20 = vpop.f32.mrb[5].mxu0 }
 0x12c   : > { %v5102_v21 = vpop.f32.mrb[6].mxu0 }
 0x12d   : > { %v686_v22 = vpack.c.bf16 %v5102_v21, %v5101_v19  ;;  %v671_v23 = vpop.f32.mrb[7].mxu0  ;;  %5106 = vmatpush3.bf16.msra.mxu1 %v684_v16 }
 0x12e   : > { %v685_v24 = vpack.c.bf16 %v671_v23, %v668_v20 }
 0x130   : > { %5107 = vmatprep.subr.bf16.mxu1 %v685_v24 }
 0x131   : > { %5108 = vmatpush3.bf16.msra.mxu1 %v685_v24 }
 0x132   : > { %5109 = vmatprep.subr.bf16.mxu1 %v686_v22 }
 0x135   : > { %5110 = vmatpush3.bf16.msra.mxu1 %v686_v22 }
 0x138   : > { %5112 = vmatmul.mubr.msk.bf16.vlgmr.msra.gmra.mrb[0].mxu1 %vm714_vm2, %v5833_v25 }
 0x139   : > { %5115 = vmatprep.mubr.msk.bf16.mxu1 %vm714_vm2, %v5836_v26 }
 0x140   : > { %5116 = vmatmul.mubr.msk.bf16.gmra.mrb[4].mxu1 %vm714_vm2, %v5843_v27 }
 0x141   : > { %5151 = vmatprep.mubr.msk.bf16.mxu1 %vm714_vm2, %v5810_v6 }
 0x20b   : > { %v5113_v31 = vpop.f32.mrb[0].mxu1 }
 0x20c   : > { %v770_v32 = vadd.f32 %v5113_v31, %v4578_v30  ;;  %v761_v33 = vpop.f32.mrb[1].mxu1 }
 0x20d   : > { %v762_v34 = vadd.f32 %v4578_v30, %v761_v33  ;;  %v5114_v35 = vpop.f32.mrb[2].mxu1 }
 0x20e   : > { %v773_v36 = vadd.f32 %v5114_v35, %v4578_v30  ;;  %v764_v37 = vpop.f32.mrb[3].mxu1  ;;  %v794_v39 = vmax.f32 %v770_v32, 0.0 }
 0x20f   : > { %v765_v38 = vadd.f32 %v4578_v30, %v764_v37  ;;  %v792_v41 = vmax.f32 %v762_v34, 0.0 }
 0x210   : > { %v795_v40 = vmax.f32 %v773_v36, 0.0 }
 0x211   : > { %v793_v42 = vmax.f32 %v765_v38, 0.0 }
 0x212   : > { %v801_v43 = vpack.c.bf16 %v795_v40, %v794_v39 }
 0x213   : > { %v800_v44 = vpack.c.bf16 %v793_v42, %v792_v41  ;;  %v5117_v45 = vpop.f32.mrb[4].mxu1 }
 0x214   : > { %v786_v46 = vadd.f32 %v5117_v45, %v4578_v30  ;;  %v777_v47 = vpop.f32.mrb[5].mxu1 }
 0x215   : > { %v778_v48 = vadd.f32 %v4578_v30, %v777_v47  ;;  %v5118_v49 = vpop.f32.mrb[6].mxu1  ;;  %5135 = vmatprep.mubr.bf16.mxu0 %v800_v44 }
 0x216   : > { %v789_v50 = vadd.f32 %v5118_v49, %v4578_v30  ;;  %v780_v51 = vpop.f32.mrb[7].mxu1  ;;  %5136 = vmatmul.mubr.bf16.vlgmr.msra.gmra.mrb[8].mxu0 %v801_v43  ;;  %v798_v53 = vmax.f32 %v786_v46, 0.0 }
 0x217   : > { %v781_v52 = vadd.f32 %v4578_v30, %v780_v51  ;;  %v796_v55 = vmax.f32 %v778_v48, 0.0 }
 0x218   : > { %v799_v54 = vmax.f32 %v789_v50, 0.0 }
 0x219   : > { %v797_v56 = vmax.f32 %v781_v52, 0.0 }
 0x21a   : > { %v803_v57 = vpack.c.bf16 %v799_v54, %v798_v53 }
 0x21b   : > { %v802_v58 = vpack.c.bf16 %v797_v56, %v796_v55 }
 0x21d   : > { %5139 = vmatprep.mubr.bf16.mxu0 %v802_v58 }
 0x21e   : > { %5140 = vmatmul.mubr.bf16.gmra.mrb[12].mxu0 %v803_v57 }
 0x21f   : > { %5191 = vmatprep.mubr.msk.bf16.mxu0 %vm714_vm2, %v5810_v6  ;;  %v5302_v6 = vld [vmem:[%s6108_s7] sm:$0xff]  }
 0x2e9   : > { %v5137_v59 = vpop.f32.mrb[8].mxu0 }
 0x2ea   : > { %v902_v60 = vpop.f32.mrb[9].mxu0 }
 0x2eb   : > { %v5138_v61 = vpop.f32.mrb[10].mxu0 }
 0x2ec   : > { %v934_v62 = vpack.c.bf16 %v5138_v61, %v5137_v59  ;;  %v905_v63 = vpop.f32.mrb[11].mxu0  ;;  %v5628_v59 = vmov 0.0   ;;  %v5324_v61 = vld [vmem:[%s6110_s9 + $0x44] ss:$16 sps:$4 sm:$0xff]  }
 0x2ed   : > { %v933_v0 = vpack.c.bf16 %v905_v63, %v902_v60  ;;  %v5310_v60 = vld [vmem:[%s6110_s9] ss:$16 sps:$4 sm:$0xff]   ;;  %v5330_v63 = vld [vmem:[%s6110_s9 + $0x64] ss:$16 sps:$4 sm:$0xff]  }
 0x2ef   : > { %5143 = vmatprep.subr.bf16.mxu1 %v933_v0 }
 0x2f0   : > { %5144 = vmatpush3.bf16.msra.mxu1 %v933_v0  ;;  %v5328_v0 = vld [vmem:[%s6110_s9 + $0x60] ss:$16 sps:$4 sm:$0xff]  }
 0x2f1   : > { %v5141_v1 = vpop.f32.mrb[12].mxu0  ;;  %5145 = vmatprep.subr.bf16.mxu1 %v934_v62 }
 0x2f2   : > { %v918_v2 = vpop.f32.mrb[13].mxu0 }
 0x2f3   : > { %v5142_v3 = vpop.f32.mrb[14].mxu0 }
 0x2f4   : > { %v936_v4 = vpack.c.bf16 %v5142_v3, %v5141_v1  ;;  %v921_v5 = vpop.f32.mrb[15].mxu0  ;;  %5146 = vmatpush3.bf16.msra.mxu1 %v934_v62  ;;  %v5322_v62 = vld [vmem:[%s6110_s9 + $0x40] ss:$16 sps:$4 sm:$0xff]   ;;  %v5336_v1 = vld [vmem:[%s6110_s9 + $0x84] ss:$16 sps:$4 sm:$0xff]  }
 0x2f5   : > { %v935_v7 = vpack.c.bf16 %v921_v5, %v918_v2  ;;  %v5334_v2 = vld [vmem:[%s6110_s9 + $0x80] ss:$16 sps:$4 sm:$0xff]   ;;  %v5342_v3 = vld [vmem:[%s6110_s9 + $0xa4] ss:$16 sps:$4 sm:$0xff]  }
 0x2f6   : > { %v5348_v5 = vld [vmem:[%s6110_s9 + $0xc4] ss:$16 sps:$4 sm:$0xff]  }
 0x2f7   : > { %5147 = vmatprep.subr.bf16.mxu1 %v935_v7 }
 0x2f8   : > { %5148 = vmatpush3.bf16.msra.mxu1 %v935_v7  ;;  %v5346_v7 = vld [vmem:[%s6110_s9 + $0xc0] ss:$16 sps:$4 sm:$0xff]  }
 0x2f9   : > { %5149 = vmatprep.subr.bf16.mxu1 %v936_v4 }
 0x2fc   : > { %5150 = vmatpush3.bf16.msra.mxu1 %v936_v4  ;;  %v5340_v4 = vld [vmem:[%s6110_s9 + $0xa0] ss:$16 sps:$4 sm:$0xff]  }
 0x2fd   : > { %5159 = vmatprep.subr.bf16.mxu1 %v5302_v6 }
 0x2ff   : > { %5152 = vmatmul.mubr.msk.bf16.vlgmr.msra.gmra.mrb[8].mxu1 %vm714_vm2, %v5833_v25 }
 0x300   : > { %5155 = vmatprep.mubr.msk.bf16.mxu1 %vm714_vm2, %v5836_v26  ;;  %5160 = vmatpush3.bf16.msra.mxu1 %v5302_v6  ;;  %v5354_v6 = vld [vmem:[%s6110_s9 + $0xe4] ss:$16 sps:$4 sm:$0xff]  }
 0x301   : > { %5161 = vmatprep.subr.bf16.mxu1 %v5303_v8 }
 0x304   : > { %5162 = vmatpush3.bf16.msra.mxu1 %v5303_v8  ;;  %v5352_v8 = vld [vmem:[%s6110_s9 + $0xe0] ss:$16 sps:$4 sm:$0xff]  }
 0x305   : > { %5163 = vmatprep.subr.bf16.mxu1 %v5304_v9 }
 0x307   : > { %5156 = vmatmul.mubr.msk.bf16.gmra.mrb[12].mxu1 %vm714_vm2, %v5843_v27 }
 0x308   : > { %5164 = vmatpush3.bf16.msra.mxu1 %v5304_v9  ;;  %v4608_v9 = vld [vmem:[%s6109_s8] ss:$0 sm:$0xff] }
 0x309   : > { %5165 = vmatprep.subr.bf16.mxu1 %v5305_v10 }
 0x30c   : > { %5166 = vmatpush3.bf16.msra.mxu1 %v5305_v10 }
 0x30d   : > { %5167 = vmatprep.subr.bf16.mxu1 %v5306_v11 }
 0x310   : > { %5168 = vmatpush3.bf16.msra.mxu1 %v5306_v11 }
 0x311   : > { %5169 = vmatprep.subr.bf16.mxu1 %v5307_v12 }
 0x314   : > { %5170 = vmatpush3.bf16.msra.mxu1 %v5307_v12 }
 0x315   : > { %5171 = vmatprep.subr.bf16.mxu1 %v5308_v13 }
 0x318   : > { %5172 = vmatpush3.bf16.msra.mxu1 %v5308_v13 }
 0x319   : > { %5173 = vmatprep.subr.bf16.mxu1 %v5309_v14 }
 0x31c   : > { %5174 = vmatpush3.bf16.msra.mxu1 %v5309_v14 }
 0x3d2   : > { %v5153_v16 = vpop.f32.mrb[8].mxu1 }
 0x3d3   : > { %v987_v17 = vadd.f32 %v5153_v16, %v4595_v15  ;;  %v978_v18 = vpop.f32.mrb[9].mxu1 }
 0x3d4   : > { %v979_v19 = vadd.f32 %v4595_v15, %v978_v18  ;;  %v5154_v20 = vpop.f32.mrb[10].mxu1 }
 0x3d5   : > { %v990_v21 = vadd.f32 %v5154_v20, %v4595_v15  ;;  %v981_v22 = vpop.f32.mrb[11].mxu1  ;;  %v1011_v24 = vmax.f32 %v987_v17, 0.0 }
 0x3d6   : > { %v982_v23 = vadd.f32 %v4595_v15, %v981_v22  ;;  %v1009_v29 = vmax.f32 %v979_v19, 0.0 }
 0x3d7   : > { %v1012_v28 = vmax.f32 %v990_v21, 0.0 }
 0x3d8   : > { %v1010_v30 = vmax.f32 %v982_v23, 0.0 }
 0x3d9   : > { %v1018_v31 = vpack.c.bf16 %v1012_v28, %v1011_v24 }
 0x3da   : > { %v1017_v32 = vpack.c.bf16 %v1010_v30, %v1009_v29  ;;  %v5157_v33 = vpop.f32.mrb[12].mxu1 }
 0x3db   : > { %v1003_v34 = vadd.f32 %v5157_v33, %v4595_v15  ;;  %v994_v35 = vpop.f32.mrb[13].mxu1 }
 0x3dc   : > { %v995_v36 = vadd.f32 %v4595_v15, %v994_v35  ;;  %v5158_v37 = vpop.f32.mrb[14].mxu1  ;;  %5175 = vmatprep.mubr.bf16.mxu1 %v1017_v32 }
 0x3dd   : > { %v1006_v38 = vadd.f32 %v5158_v37, %v4595_v15  ;;  %v997_v39 = vpop.f32.mrb[15].mxu1  ;;  %5176 = vmatmul.mubr.bf16.vlgmr.msra.gmra.mrb[16].mxu1 %v1018_v31  ;;  %v1015_v41 = vmax.f32 %v1003_v34, 0.0 }
 0x3de   : > { %v998_v40 = vadd.f32 %v4595_v15, %v997_v39  ;;  %v1013_v43 = vmax.f32 %v995_v36, 0.0 }
 0x3df   : > { %v1016_v42 = vmax.f32 %v1006_v38, 0.0 }
 0x3e0   : > { %v1014_v44 = vmax.f32 %v998_v40, 0.0 }
 0x3e1   : > { %v1020_v45 = vpack.c.bf16 %v1016_v42, %v1015_v41  ;;  %v5315_v41 = vld [vmem:[%s6110_s9 + $0xc] ss:$16 sps:$4 sm:$0xff]   ;;  %v579_v42 = vld [vmem:[%s556_s16] sm:$0x3] }
 0x3e2   : > { %v1019_v46 = vpack.c.bf16 %v1014_v44, %v1013_v43  ;;  %v5313_v43 = vld [vmem:[%s6110_s9 + $0x8] ss:$16 sps:$4 sm:$0xff]   ;;  %v5321_v44 = vld [vmem:[%s6110_s9 + $0x2c] ss:$16 sps:$4 sm:$0xff]  }
 0x3e4   : > { %5179 = vmatprep.mubr.bf16.mxu1 %v1019_v46  ;;  %v5327_v46 = vld [vmem:[%s6110_s9 + $0x4c] ss:$16 sps:$4 sm:$0xff]  }
 0x3e5   : > { %5180 = vmatmul.mubr.bf16.gmra.mrb[20].mxu1 %v1020_v45  ;;  %v5319_v45 = vld [vmem:[%s6110_s9 + $0x28] ss:$16 sps:$4 sm:$0xff]  }
 0x4b0   : > { %v5177_v47 = vpop.f32.mrb[16].mxu1 }
 0x4b1   : > { %v1119_v48 = vpop.f32.mrb[17].mxu1 }
 0x4b2   : > { %v5178_v49 = vpop.f32.mrb[18].mxu1 }
 0x4b3   : > { %v1151_v50 = vpack.c.bf16 %v5178_v49, %v5177_v47  ;;  %v1122_v51 = vpop.f32.mrb[19].mxu1  ;;  %v5325_v47 = vld [vmem:[%s6110_s9 + $0x48] ss:$16 sps:$4 sm:$0xff]  }
 0x4b4   : > { %v1150_v52 = vpack.c.bf16 %v1122_v51, %v1119_v48  ;;  %v5333_v48 = vld [vmem:[%s6110_s9 + $0x6c] ss:$16 sps:$4 sm:$0xff]   ;;  %v5331_v49 = vld [vmem:[%s6110_s9 + $0x68] ss:$16 sps:$4 sm:$0xff]  }
 0x4b5   : > { %v5337_v51 = vld [vmem:[%s6110_s9 + $0x88] ss:$16 sps:$4 sm:$0xff]  }
 0x4b6   : > { %5183 = vmatprep.subr.bf16.mxu0 %v1150_v52 }
 0x4b7   : > { %5184 = vmatpush3.bf16.msra.mxu0 %v1150_v52  ;;  %v5345_v52 = vld [vmem:[%s6110_s9 + $0xac] ss:$16 sps:$4 sm:$0xff]  }
 0x4b8   : > { %v5181_v53 = vpop.f32.mrb[20].mxu1  ;;  %5185 = vmatprep.subr.bf16.mxu0 %v1151_v50 }
 0x4b9   : > { %v1135_v54 = vpop.f32.mrb[21].mxu1 }
 0x4ba   : > { %v5182_v55 = vpop.f32.mrb[22].mxu1 }
 0x4bb   : > { %v1153_v56 = vpack.c.bf16 %v5182_v55, %v5181_v53  ;;  %v1138_v57 = vpop.f32.mrb[23].mxu1  ;;  %5186 = vmatpush3.bf16.msra.mxu0 %v1151_v50  ;;  %v5339_v50 = vld [vmem:[%s6110_s9 + $0x8c] ss:$16 sps:$4 sm:$0xff]   ;;  %v5343_v53 = vld [vmem:[%s6110_s9 + $0xa8] ss:$16 sps:$4 sm:$0xff]  }
 0x4bc   : > { %v1152_v58 = vpack.c.bf16 %v1138_v57, %v1135_v54  ;;  %v5351_v54 = vld [vmem:[%s6110_s9 + $0xcc] ss:$16 sps:$4 sm:$0xff]   ;;  %v5349_v55 = vld [vmem:[%s6110_s9 + $0xc8] ss:$16 sps:$4 sm:$0xff]  }
 0x4bd   : > { %v5355_v57 = vld [vmem:[%s6110_s9 + $0xe8] ss:$16 sps:$4 sm:$0xff]  }
 0x4be   : > { %5187 = vmatprep.subr.bf16.mxu0 %v1152_v58 }
 0x4bf   : > { %5188 = vmatpush3.bf16.msra.mxu0 %v1152_v58  ;;  %v5630_v58 = vmov 0  }
 0x4c0   : > { %5189 = vmatprep.subr.bf16.mxu0 %v1153_v56  ;;  %1528 = vmatprep.mubr.bf16.mxu1 %v5630_v58 }
 0x4c3   : > { %5190 = vmatpush3.bf16.msra.mxu0 %v1153_v56  ;;  %v5357_v56 = vld [vmem:[%s6110_s9 + $0xec] ss:$16 sps:$4 sm:$0xff]  }
 0x4c4   : > { %5199 = vmatprep.subr.bf16.mxu0 %v5628_v59 }
 0x4c6   : > { %5192 = vmatmul.mubr.msk.bf16.vlgmr.msra.gmra.mrb[16].mxu0 %vm714_vm2, %v5833_v25  ;;  %v5312_v25 = vld [vmem:[%s6110_s9 + $0x4] ss:$16 sps:$4 sm:$0xff]  }
 0x4c7   : > { %5195 = vmatprep.mubr.msk.bf16.mxu0 %vm714_vm2, %v5836_v26  ;;  %v5318_v26 = vld [vmem:[%s6110_s9 + $0x24] ss:$16 sps:$4 sm:$0xff]   ;;  %1496 = vmatprep.subr.bf16.mxu1 %v5312_v25 }
 0x4c8   : > { %1497 = vmatpush1.bf16.msra.mxu1 %v5310_v60  ;;  %v1586_v60 = vld [vmem:[#allocation2 + $0x20] sm:$0xff]  ;;  %v1584_v25 = vld [vmem:[#allocation2 + $0x10] sm:$0xff] }
 0x4c9   : > { %1498 = vmatprep.subr.bf16.mxu1 %v5318_v26 }
 0x4ce   : > { %5196 = vmatmul.mubr.msk.bf16.gmra.mrb[20].mxu0 %vm714_vm2, %v5843_v27  ;;  %v5316_v27 = vld [vmem:[%s6110_s9 + $0x20] ss:$16 sps:$4 sm:$0xff]  }
 0x4cf   : > { %5207 = vmatprep.mubr.msk.bf16.mxu0 %vm5629_vm3, %v5628_v59  ;;  %1499 = vmatpush1.bf16.msra.mxu1 %v5316_v27 }
 0x4d0   : > { %1500 = vmatprep.subr.bf16.mxu1 %v5324_v61  ;;  %v1588_v61 = vld [vmem:[#allocation2 + $0x30] sm:$0xff] }
 0x4d3   : > { %1501 = vmatpush1.bf16.msra.mxu1 %v5322_v62  ;;  %v4650_v62 = vcombine.low %v1584_v25, %v1588_v61 }
 0x4d4   : > { %1502 = vmatprep.subr.bf16.mxu1 %v5330_v63  ;;  %v4651_v63 = vcombine.high %v1584_v25, %v1588_v61  ;;  %v1648_v61 = vld [vmem:[#allocation2 + $0x210] sm:$0xff] }
 0x4d7   : > { %1503 = vmatpush1.bf16.msra.mxu1 %v5328_v0  ;;  %v1590_v0 = vld [vmem:[#allocation2 + $0x40] sm:$0xff] }
 0x4d8   : > { %1504 = vmatprep.subr.bf16.mxu1 %v5336_v1  ;;  %v1594_v1 = vld [vmem:[#allocation2 + $0x60] sm:$0xff] }
 0x4db   : > { %1505 = vmatpush1.bf16.msra.mxu1 %v5334_v2  ;;  %v1592_v2 = vld [vmem:[#allocation2 + $0x50] sm:$0xff] }
 0x4dc   : > { %1506 = vmatprep.subr.bf16.mxu1 %v5342_v3  ;;  %v1596_v3 = vld [vmem:[#allocation2 + $0x70] sm:$0xff] }
 0x4df   : > { %1507 = vmatpush1.bf16.msra.mxu1 %v5340_v4 }
 0x4e0   : > { %1508 = vmatprep.subr.bf16.mxu1 %v5348_v5 }
 0x4e3   : > { %1509 = vmatpush1.bf16.msra.mxu1 %v5346_v7 }
 0x4e4   : > { %1510 = vmatprep.subr.bf16.mxu1 %v5354_v6  ;;  %v4655_v6 = vcombine.high %v1590_v0, %v1594_v1 }
 0x4e7   : > { %1511 = vmatpush1.bf16.msra.mxu1 %v5352_v8  ;;  %v4659_v8 = vcombine.high %v1592_v2, %v1596_v3 }
 0x4e8   : > { %3324 = vmatprep.subr.bf16.mxu1 %v4651_v63 }
 0x599   : > { %v5193_v10 = vpop.f32.mrb[16].mxu0 }
 0x59a   : > { %v1204_v11 = vadd.f32 %v5193_v10, %v4608_v9  ;;  %v1195_v12 = vpop.f32.mrb[17].mxu0 }
 0x59b   : > { %v1196_v13 = vadd.f32 %v4608_v9, %v1195_v12  ;;  %v5194_v14 = vpop.f32.mrb[18].mxu0  ;;  %v1600_v12 = vld [vmem:[#allocation2 + $0x90] sm:$0xff] }
 0x59c   : > { %v1207_v15 = vadd.f32 %v5194_v14, %v4608_v9  ;;  %v1198_v16 = vpop.f32.mrb[19].mxu0  ;;  %v1228_v18 = vmax.f32 %v1204_v11, 0.0  ;;  %v1602_v11 = vld [vmem:[#allocation2 + $0xa0] sm:$0xff] }
 0x59d   : > { %v1199_v17 = vadd.f32 %v4608_v9, %v1198_v16  ;;  %v1226_v20 = vmax.f32 %v1196_v13, 0.0  ;;  %v1604_v13 = vld [vmem:[#allocation2 + $0xb0] sm:$0xff]  ;;  %v4658_v16 = vcombine.low %v1592_v2, %v1596_v3  ;;  %v1654_v3 = vld [vmem:[#allocation2 + $0x240] sm:$0xff] }
 0x59e   : > { %v1229_v19 = vmax.f32 %v1207_v15, 0.0  ;;  %v4654_v15 = vcombine.low %v1590_v0, %v1594_v1 }
 0x59f   : > { %v1227_v21 = vmax.f32 %v1199_v17, 0.0 }
 0x5a0   : > { %v1235_v22 = vpack.c.bf16 %v1229_v19, %v1228_v18  ;;  %v4667_v18 = vcombine.high %v1600_v12, %v1604_v13  ;;  %v1606_v19 = vld [vmem:[#allocation2 + $0xc0] sm:$0xff] }
 0x5a1   : > { %v1234_v23 = vpack.c.bf16 %v1227_v21, %v1226_v20  ;;  %v5197_v24 = vpop.f32.mrb[20].mxu0  ;;  %v1610_v20 = vld [vmem:[#allocation2 + $0xe0] sm:$0xff]  ;;  %v1608_v21 = vld [vmem:[#allocation2 + $0xd0] sm:$0xff] }
 0x5a2   : > { %v1220_v28 = vadd.f32 %v5197_v24, %v4608_v9  ;;  %v1211_v29 = vpop.f32.mrb[21].mxu0  ;;  %v4666_v24 = vcombine.low %v1600_v12, %v1604_v13  ;;  %v1666_v12 = vld [vmem:[#allocation2 + $0x2a0] sm:$0xff]  ;;  %v1664_v13 = vld [vmem:[#allocation2 + $0x290] sm:$0xff] }
 0x5a3   : > { %v1212_v30 = vadd.f32 %v4608_v9, %v1211_v29  ;;  %v5198_v31 = vpop.f32.mrb[22].mxu0  ;;  %5200 = vmatpush3.bf16.msra.mxu0 %v1234_v23 }
 0x5a4   : > { %v1223_v32 = vadd.f32 %v5198_v31, %v4608_v9  ;;  %v1214_v33 = vpop.f32.mrb[23].mxu0  ;;  %5201 = vmatprep.subr.bf16.mxu0 %v5628_v59  ;;  %v1232_v35 = vmax.f32 %v1220_v28, 0.0  ;;  %v4671_v28 = vcombine.high %v1606_v19, %v1610_v20  ;;  %v1618_v31 = vld [vmem:[#allocation2 + $0x120] sm:$0xff] }
 0x5a5   : > { %v1215_v34 = vadd.f32 %v4608_v9, %v1214_v33  ;;  %v1230_v37 = vmax.f32 %v1212_v30, 0.0  ;;  %v1598_v9 = vld [vmem:[#allocation2 + $0x80] sm:$0xff]  ;;  %v1620_v33 = vld [vmem:[#allocation2 + $0x130] sm:$0xff] }
 0x5a6   : > { %v1233_v36 = vmax.f32 %v1223_v32, 0.0  ;;  %v4663_v17 = vcombine.high %v1598_v9, %v1602_v11  ;;  %v4662_v23 = vcombine.low %v1598_v9, %v1602_v11  ;;  %v1614_v30 = vld [vmem:[#allocation2 + $0x100] sm:$0xff]  ;;  %v1616_v32 = vld [vmem:[#allocation2 + $0x110] sm:$0xff] }
 0x5a7   : > { %v1231_v38 = vmax.f32 %v1215_v34, 0.0  ;;  %5202 = vmatpush3.bf16.msra.mxu0 %v1235_v22  ;;  %v1612_v22 = vld [vmem:[#allocation2 + $0xf0] sm:$0xff]  ;;  %v4670_v34 = vcombine.low %v1606_v19, %v1610_v20  ;;  %v1662_v11 = vld [vmem:[#allocation2 + $0x280] sm:$0xff] }
 0x5a8   : > { %v1237_v39 = vpack.c.bf16 %v1233_v36, %v1232_v35  ;;  %5203 = vmatprep.subr.bf16.mxu0 %v5628_v59  ;;  %v4675_v29 = vcombine.high %v1608_v21, %v1612_v22  ;;  %v4674_v35 = vcombine.low %v1608_v21, %v1612_v22  ;;  %v4679_v36 = vcombine.high %v1614_v30, %v1618_v31  ;;  %v1670_v19 = vld [vmem:[#allocation2 + $0x2c0] sm:$0xff]  ;;  %v1672_v21 = vld [vmem:[#allocation2 + $0x2d0] sm:$0xff] }
 0x5a9   : > { %v1236_v40 = vpack.c.bf16 %v1231_v38, %v1230_v37  ;;  %v4683_v37 = vcombine.high %v1616_v32, %v1620_v33  ;;  %v1622_v38 = vld [vmem:[#allocation2 + $0x140] sm:$0xff]  ;;  %v1676_v22 = vld [vmem:[#allocation2 + $0x2f0] sm:$0xff] }
 0x5aa   : > { %v1674_v20 = vld [vmem:[#allocation2 + $0x2e0] sm:$0xff] }
 0x5ab   : > { %5204 = vmatpush3.bf16.msra.mxu0 %v1236_v40  ;;  %v1624_v40 = vld [vmem:[#allocation2 + $0x150] sm:$0xff] }
 0x5ac   : > { %5205 = vmatprep.subr.bf16.mxu0 %v5628_v59  ;;  %v1582_v59 = vld [vmem:[#allocation2] sm:$0xff] }
 0x5ad   : > { %v4646_v26 = vcombine.low %v1582_v59, %v1586_v60  ;;  %v4647_v27 = vcombine.high %v1582_v59, %v1586_v60 }
 0x5af   : > { %5206 = vmatpush3.bf16.msra.mxu0 %v1237_v39  ;;  %v1626_v39 = vld [vmem:[#allocation2 + $0x160] sm:$0xff] }
 0x5b0   : > { %1537 = vmatprep.subr.bf16.mxu0 %v5315_v41  ;;  %v1628_v41 = vld [vmem:[#allocation2 + $0x170] sm:$0xff] }
 0x5b2   : > { %5208 = vmatmul.mubr.msk.bf16.vlgmr.msra.gmra.mrb[24].mxu0 %vm714_vm2, %v579_v42  ;;  %v4678_v42 = vcombine.low %v1614_v30, %v1618_v31  ;;  %v1678_v30 = vld [vmem:[#allocation2 + $0x300] sm:$0xff] }
 0x5b3   : > { %1538 = vmatpush1.bf16.msra.mxu0 %v5313_v43  ;;  %1569 = vmatprep.mubr.bf16.mxu0 %v5630_v58  ;;  %v4682_v43 = vcombine.low %v1616_v32, %v1620_v33  ;;  %v1682_v31 = vld [vmem:[#allocation2 + $0x320] sm:$0xff]  ;;  %v1680_v32 = vld [vmem:[#allocation2 + $0x310] sm:$0xff] }
 0x5b4   : > { %1539 = vmatprep.subr.bf16.mxu0 %v5321_v44  ;;  %v4687_v44 = vcombine.high %v1622_v38, %v1626_v39  ;;  %v1684_v33 = vld [vmem:[#allocation2 + $0x330] sm:$0xff] }
 0x5b7   : > { %1540 = vmatpush1.bf16.msra.mxu0 %v5319_v45  ;;  %v4691_v45 = vcombine.high %v1624_v40, %v1628_v41 }
 0x5b8   : > { %1541 = vmatprep.subr.bf16.mxu0 %v5327_v46  ;;  %v1630_v46 = vld [vmem:[#allocation2 + $0x180] sm:$0xff] }
 0x5bb   : > { %1542 = vmatpush1.bf16.msra.mxu0 %v5325_v47  ;;  %v1634_v47 = vld [vmem:[#allocation2 + $0x1a0] sm:$0xff] }
 0x5bc   : > { %1543 = vmatprep.subr.bf16.mxu0 %v5333_v48  ;;  %v1632_v48 = vld [vmem:[#allocation2 + $0x190] sm:$0xff]  ;;  %v4694_v58 = vcombine.low %v1630_v46, %v1634_v47 }
 0x5bf   : > { %1544 = vmatpush1.bf16.msra.mxu0 %v5331_v49  ;;  %v1636_v49 = vld [vmem:[#allocation2 + $0x1b0] sm:$0xff] }
 0x5c0   : > { %1545 = vmatprep.subr.bf16.mxu0 %v5339_v50  ;;  %v4686_v50 = vcombine.low %v1622_v38, %v1626_v39  ;;  %v4698_v59 = vcombine.low %v1632_v48, %v1636_v49  ;;  %v1686_v38 = vld [vmem:[#allocation2 + $0x340] sm:$0xff] }
 0x5c1   : > { %v1690_v39 = vld [vmem:[#allocation2 + $0x360] sm:$0xff] }
 0x5c3   : > { %1546 = vmatpush1.bf16.msra.mxu0 %v5337_v51  ;;  %v4690_v51 = vcombine.low %v1624_v40, %v1628_v41  ;;  %v1688_v40 = vld [vmem:[#allocation2 + $0x350] sm:$0xff] }
 0x5c4   : > { %1547 = vmatprep.subr.bf16.mxu0 %v5345_v52  ;;  %v4695_v52 = vcombine.high %v1630_v46, %v1634_v47  ;;  %v1692_v41 = vld [vmem:[#allocation2 + $0x370] sm:$0xff]  ;;  %v1694_v46 = vld [vmem:[#allocation2 + $0x380] sm:$0xff] }
 0x5c5   : > { %v1698_v47 = vld [vmem:[#allocation2 + $0x3a0] sm:$0xff] }
 0x5c7   : > { %1548 = vmatpush1.bf16.msra.mxu0 %v5343_v53  ;;  %v4699_v53 = vcombine.high %v1632_v48, %v1636_v49  ;;  %v1696_v48 = vld [vmem:[#allocation2 + $0x390] sm:$0xff] }
 0x5c8   : > { %1549 = vmatprep.subr.bf16.mxu0 %v5351_v54  ;;  %v1638_v54 = vld [vmem:[#allocation2 + $0x1c0] sm:$0xff]  ;;  %v1700_v49 = vld [vmem:[#allocation2 + $0x3b0] sm:$0xff] }
 0x5cb   : > { %1550 = vmatpush1.bf16.msra.mxu0 %v5349_v55  ;;  %v1642_v55 = vld [vmem:[#allocation2 + $0x1e0] sm:$0xff] }
 0x5cc   : > { %1551 = vmatprep.subr.bf16.mxu0 %v5357_v56  ;;  %v1640_v56 = vld [vmem:[#allocation2 + $0x1d0] sm:$0xff]  ;;  %v4703_v60 = vcombine.high %v1638_v54, %v1642_v55  ;;  %v4702_v63 = vcombine.low %v1638_v54, %v1642_v55  ;;  %v4758_v54 = vcombine.low %v1694_v46, %v1698_v47  ;;  %v4762_v55 = vcombine.low %v1696_v48, %v1700_v49 }
 0x5cf   : > { %1552 = vmatpush1.bf16.msra.mxu0 %v5355_v57  ;;  %v1644_v57 = vld [vmem:[#allocation2 + $0x1f0] sm:$0xff] }
 0x5d0   : > { %3160 = vmatprep.subr.bf16.mxu0 %v4647_v27  ;;  %v4707_v25 = vcombine.high %v1640_v56, %v1644_v57  ;;  %v1650_v27 = vld [vmem:[#allocation2 + $0x220] sm:$0xff]  ;;  %v4706_v0 = vcombine.low %v1640_v56, %v1644_v57 }
 0x5d1   : > { %v1702_v56 = vld [vmem:[#allocation2 + $0x3c0] sm:$0xff] }
 0x5d2   : > { %v1706_v57 = vld [vmem:[#allocation2 + $0x3e0] sm:$0xff] }
 0x685   : > { %v1275_v4 = vpop.f32.mrb[24].mxu0 }
 0x686   : > { %v1281_v5 = vpack.c.bf16 %v1275_v4, %v1275_v4  ;;  %v5209_v7 = vpop.f32.mrb[25].mxu0  ;;  %v1658_v4 = vld [vmem:[#allocation2 + $0x260] sm:$0xff] }
 0x687   : > { %v1278_v10 = vpop.f32.mrb[26].mxu0  ;;  %v1660_v7 = vld [vmem:[#allocation2 + $0x270] sm:$0xff]  ;;  %v4719_v9 = vcombine.high %v1654_v3, %v1658_v4 }
 0x688   : > { %v5210_v14 = vpop.f32.mrb[27].mxu0  ;;  %1529 = vmatmul.mubr.bf16.vlgmr.msra.gmra.mrb[24].mxu1 %v1281_v5  ;;  %1570 = vmatmul.mubr.bf16.vlgmr.msra.gmra.mrb[28].mxu0 %v1281_v5  ;;  %v1656_v5 = vld [vmem:[#allocation2 + $0x250] sm:$0xff] }
 0x689   : > { %3161 = vmatpush1.bf16.msra.mxu0 %v4646_v26  ;;  %3325 = vmatpush1.bf16.msra.mxu1 %v4650_v62  ;;  %v1646_v26 = vld [vmem:[#allocation2 + $0x200] sm:$0xff]  ;;  %v1652_v62 = vld [vmem:[#allocation2 + $0x230] sm:$0xff]  ;;  %v4723_v10 = vcombine.high %v1656_v5, %v1660_v7 }
 0x68a   : > { %3162 = vmatprep.subr.bf16.mxu0 %v4655_v6  ;;  %3326 = vmatprep.subr.bf16.mxu1 %v4659_v8  ;;  %v4711_v1 = vcombine.high %v1646_v26, %v1650_v27  ;;  %v4715_v2 = vcombine.high %v1648_v61, %v1652_v62  ;;  %v4710_v6 = vcombine.low %v1646_v26, %v1650_v27  ;;  %v1668_v14 = vld [vmem:[#allocation2 + $0x2b0] sm:$0xff] }
 0x68b   : > { %v4714_v8 = vcombine.low %v1648_v61, %v1652_v62  ;;  %v1710_v61 = vld [vmem:[#allocation2 + $0x400] sm:$0xff] }
 0x68c   : > { %v1714_v62 = vld [vmem:[#allocation2 + $0x420] sm:$0xff] }
 0x68d   : > { %3163 = vmatpush1.bf16.msra.mxu0 %v4654_v15  ;;  %3327 = vmatpush1.bf16.msra.mxu1 %v4658_v16  ;;  %v4718_v15 = vcombine.low %v1654_v3, %v1658_v4  ;;  %v4722_v16 = vcombine.low %v1656_v5, %v1660_v7  ;;  %v1316_v5 = vlaneseq }
 0x68e   : > { %3164 = vmatprep.subr.bf16.mxu0 %v4663_v17  ;;  %3328 = vmatprep.subr.bf16.mxu1 %v4667_v18  ;;  %v4727_v17 = vcombine.high %v1662_v11, %v1666_v12  ;;  %v4731_v18 = vcombine.high %v1664_v13, %v1668_v14 }
 0x68f   : > { %v6008_v7 = vshrl.u32 %v1316_v5, 7  ;;  %v1764_v5 = vld [vmem:[#allocation2 + $0x5b0] sm:$0xff] }
 0x691   : > { %3165 = vmatpush1.bf16.msra.mxu0 %v4662_v23  ;;  %3329 = vmatpush1.bf16.msra.mxu1 %v4666_v24  ;;  %v4726_v23 = vcombine.low %v1662_v11, %v1666_v12  ;;  %v4730_v24 = vcombine.low %v1664_v13, %v1668_v14 }
 0x692   : > { %3166 = vmatprep.subr.bf16.mxu0 %v4671_v28  ;;  %3330 = vmatprep.subr.bf16.mxu1 %v4675_v29  ;;  %v4735_v28 = vcombine.high %v1670_v19, %v1674_v20  ;;  %v4739_v29 = vcombine.high %v1672_v21, %v1676_v22 }
 0x695   : > { %3167 = vmatpush1.bf16.msra.mxu0 %v4670_v34  ;;  %3331 = vmatpush1.bf16.msra.mxu1 %v4674_v35  ;;  %v4734_v34 = vcombine.low %v1670_v19, %v1674_v20  ;;  %v4738_v35 = vcombine.low %v1672_v21, %v1676_v22  ;;  %v1718_v22 = vld [vmem:[#allocation2 + $0x440] sm:$0xff] }
 0x696   : > { %3168 = vmatprep.subr.bf16.mxu0 %v4679_v36  ;;  %3332 = vmatprep.subr.bf16.mxu1 %v4683_v37  ;;  %v4743_v36 = vcombine.high %v1678_v30, %v1682_v31  ;;  %v4747_v37 = vcombine.high %v1680_v32, %v1684_v33 }
 0x699   : > { %3169 = vmatpush1.bf16.msra.mxu0 %v4678_v42  ;;  %3333 = vmatpush1.bf16.msra.mxu1 %v4682_v43  ;;  %v4742_v42 = vcombine.low %v1678_v30, %v1682_v31  ;;  %v4746_v43 = vcombine.low %v1680_v32, %v1684_v33  ;;  %v1720_v30 = vld [vmem:[#allocation2 + $0x450] sm:$0xff] }
 0x69a   : > { %3170 = vmatprep.subr.bf16.mxu0 %v4687_v44  ;;  %3334 = vmatprep.subr.bf16.mxu1 %v4691_v45  ;;  %v4751_v44 = vcombine.high %v1686_v38, %v1690_v39  ;;  %v4755_v45 = vcombine.high %v1688_v40, %v1692_v41  ;;  %v1724_v31 = vld [vmem:[#allocation2 + $0x470] sm:$0xff] }
 0x69d   : > { %3171 = vmatpush1.bf16.msra.mxu0 %v4686_v50  ;;  %3335 = vmatpush1.bf16.msra.mxu1 %v4690_v51  ;;  %v4750_v50 = vcombine.low %v1686_v38, %v1690_v39  ;;  %v4754_v51 = vcombine.low %v1688_v40, %v1692_v41  ;;  %v1728_v38 = vld [vmem:[#allocation2 + $0x490] sm:$0xff] }
 0x69e   : > { %3172 = vmatprep.subr.bf16.mxu0 %v4695_v52  ;;  %3336 = vmatprep.subr.bf16.mxu1 %v4699_v53  ;;  %v4759_v52 = vcombine.high %v1694_v46, %v1698_v47  ;;  %v4763_v53 = vcombine.high %v1696_v48, %v1700_v49  ;;  %v1732_v39 = vld [vmem:[#allocation2 + $0x4b0] sm:$0xff]  ;;  %v1738_v46 = vld [vmem:[#allocation2 + $0x4e0] sm:$0xff] }
 0x69f   : > { %v1736_v47 = vld [vmem:[#allocation2 + $0x4d0] sm:$0xff] }
 0x6a0   : > { %v1740_v48 = vld [vmem:[#allocation2 + $0x4f0] sm:$0xff] }
 0x6a1   : > { %3173 = vmatpush1.bf16.msra.mxu0 %v4694_v58  ;;  %3337 = vmatpush1.bf16.msra.mxu1 %v4698_v59  ;;  %v1704_v58 = vld [vmem:[#allocation2 + $0x3d0] sm:$0xff]  ;;  %v4767_v59 = vcombine.high %v1702_v56, %v1706_v57 }
 0x6a2   : > { %3174 = vmatprep.subr.bf16.mxu0 %v4703_v60  ;;  %3338 = vmatprep.subr.bf16.mxu1 %v4707_v25  ;;  %v1708_v60 = vld [vmem:[#allocation2 + $0x3f0] sm:$0xff]  ;;  %v4766_v25 = vcombine.low %v1702_v56, %v1706_v57 }
 0x6a3   : > { %v4770_v26 = vcombine.low %v1704_v58, %v1708_v60  ;;  %v4771_v27 = vcombine.high %v1704_v58, %v1708_v60  ;;  %v1748_v56 = vld [vmem:[#allocation2 + $0x530] sm:$0xff]  ;;  %v4802_v58 = vcombine.low %v1736_v47, %v1740_v48 }
 0x6a5   : > { %3175 = vmatpush1.bf16.msra.mxu0 %v4702_v63  ;;  %3339 = vmatpush1.bf16.msra.mxu1 %v4706_v0  ;;  %v1712_v63 = vld [vmem:[#allocation2 + $0x410] sm:$0xff]  ;;  %v4775_v0 = vcombine.high %v1710_v61, %v1714_v62 }
 0x6a6   : > { %3176 = vmatprep.subr.bf16.mxu0 %v4711_v1  ;;  %3340 = vmatprep.subr.bf16.mxu1 %v4715_v2  ;;  %v1716_v1 = vld [vmem:[#allocation2 + $0x430] sm:$0xff]  ;;  %v4774_v2 = vcombine.low %v1710_v61, %v1714_v62 }
 0x6a7   : > { %v4778_v3 = vcombine.low %v1712_v63, %v1716_v1  ;;  %v4779_v4 = vcombine.high %v1712_v63, %v1716_v1  ;;  %v1756_v61 = vld [vmem:[#allocation2 + $0x570] sm:$0xff] }
 0x6a9   : > { %3177 = vmatpush1.bf16.msra.mxu0 %v4710_v6  ;;  %3341 = vmatpush1.bf16.msra.mxu1 %v4714_v8  ;;  %v6011_v6 = vsub.s32 0, %v6008_v7  ;;  %v6016_v8 = vld [vmem:[%s6111_s10] sm:$0xf] }
 0x6aa   : > { %3178 = vmatprep.subr.bf16.mxu0 %v4719_v9  ;;  %3342 = vmatprep.subr.bf16.mxu1 %v4723_v10  ;;  %v6019_v9 = vsub.s32 1, %v6008_v7  ;;  %v1330_v10 = vsub.s32 3, %v6008_v7 }
 0x6ab   : > { %v1319_v11 = vrot.slane %v6016_v8, %v6011_v6 }
 0x6ac   : > { %v1323_v12 = vrot.slane %v6016_v8, %v6019_v9  ;;  %v1331_v13 = vrot.slane %v6016_v8, %v1330_v10 }
 0x6ad   : > { %3179 = vmatpush1.bf16.msra.mxu0 %v4718_v15  ;;  %3343 = vmatpush1.bf16.msra.mxu1 %v4722_v16 }
 0x6ae   : > { %3180 = vmatprep.subr.bf16.mxu0 %v4727_v17  ;;  %3344 = vmatprep.subr.bf16.mxu1 %v4731_v18 }
 0x6b1   : > { %3181 = vmatpush1.bf16.msra.mxu0 %v4726_v23  ;;  %3345 = vmatpush1.bf16.msra.mxu1 %v4730_v24 }
 0x6b2   : > { %3182 = vmatprep.subr.bf16.mxu0 %v4735_v28  ;;  %3346 = vmatprep.subr.bf16.mxu1 %v4739_v29  ;;  %v1722_v29 = vld [vmem:[#allocation2 + $0x460] sm:$0xff] }
 0x6b3   : > { %v4782_v41 = vcombine.low %v1718_v22, %v1722_v29 }
 0x6b5   : > { %3183 = vmatpush1.bf16.msra.mxu0 %v4734_v34  ;;  %3347 = vmatpush1.bf16.msra.mxu1 %v4738_v35  ;;  %v1726_v34 = vld [vmem:[#allocation2 + $0x480] sm:$0xff]  ;;  %v4783_v35 = vcombine.high %v1718_v22, %v1722_v29  ;;  %v1776_v29 = vld [vmem:[#allocation2 + $0x610] sm:$0xff] }
 0x6b6   : > { %3184 = vmatprep.subr.bf16.mxu0 %v4743_v36  ;;  %3348 = vmatprep.subr.bf16.mxu1 %v4747_v37  ;;  %v4787_v36 = vcombine.high %v1720_v30, %v1724_v31  ;;  %v1730_v37 = vld [vmem:[#allocation2 + $0x4a0] sm:$0xff] }
 0x6b7   : > { %v4790_v49 = vcombine.low %v1726_v34, %v1730_v37 }
 0x6b9   : > { %3185 = vmatpush1.bf16.msra.mxu0 %v4742_v42  ;;  %3349 = vmatpush1.bf16.msra.mxu1 %v4746_v43  ;;  %v4786_v42 = vcombine.low %v1720_v30, %v1724_v31  ;;  %v4791_v43 = vcombine.high %v1726_v34, %v1730_v37  ;;  %v1780_v30 = vld [vmem:[#allocation2 + $0x630] sm:$0xff]  ;;  %v1782_v37 = vld [vmem:[#allocation2 + $0x640] sm:$0xff] }
 0x6ba   : > { %3186 = vmatprep.subr.bf16.mxu0 %v4751_v44  ;;  %3350 = vmatprep.subr.bf16.mxu1 %v4755_v45  ;;  %v4795_v44 = vcombine.high %v1728_v38, %v1732_v39  ;;  %v1734_v45 = vld [vmem:[#allocation2 + $0x4c0] sm:$0xff] }
 0x6bb   : > { %v4798_v57 = vcombine.low %v1734_v45, %v1738_v46 }
 0x6bd   : > { %3187 = vmatpush1.bf16.msra.mxu0 %v4750_v50  ;;  %3351 = vmatpush1.bf16.msra.mxu1 %v4754_v51  ;;  %v4794_v50 = vcombine.low %v1728_v38, %v1732_v39  ;;  %v4799_v51 = vcombine.high %v1734_v45, %v1738_v46  ;;  %v1786_v38 = vld [vmem:[#allocation2 + $0x660] sm:$0xff]  ;;  %v1784_v39 = vld [vmem:[#allocation2 + $0x650] sm:$0xff] }
 0x6be   : > { %3188 = vmatprep.subr.bf16.mxu0 %v4759_v52  ;;  %3352 = vmatprep.subr.bf16.mxu1 %v4763_v53  ;;  %v4803_v52 = vcombine.high %v1736_v47, %v1740_v48  ;;  %v1742_v53 = vld [vmem:[#allocation2 + $0x500] sm:$0xff]  ;;  %v1792_v48 = vld [vmem:[#allocation2 + $0x690] sm:$0xff] }
 0x6bf   : > { %v1790_v46 = vld [vmem:[#allocation2 + $0x680] sm:$0xff] }
 0x6c0   : > { %v1794_v47 = vld [vmem:[#allocation2 + $0x6a0] sm:$0xff] }
 0x6c1   : > { %3189 = vmatpush1.bf16.msra.mxu0 %v4758_v54  ;;  %3353 = vmatpush1.bf16.msra.mxu1 %v4762_v55  ;;  %v1746_v54 = vld [vmem:[#allocation2 + $0x520] sm:$0xff]  ;;  %v1744_v55 = vld [vmem:[#allocation2 + $0x510] sm:$0xff] }
 0x6c2   : > { %3190 = vmatprep.subr.bf16.mxu0 %v4767_v59  ;;  %3354 = vmatprep.subr.bf16.mxu1 %v4771_v27  ;;  %v4807_v59 = vcombine.high %v1742_v53, %v1746_v54  ;;  %v4811_v60 = vcombine.high %v1744_v55, %v1748_v56  ;;  %v1752_v27 = vld [vmem:[#allocation2 + $0x550] sm:$0xff]  ;;  %v4806_v62 = vcombine.low %v1742_v53, %v1746_v54  ;;  %v1798_v54 = vld [vmem:[#allocation2 + $0x6c0] sm:$0xff] }
 0x6c3   : > { %v4810_v63 = vcombine.low %v1744_v55, %v1748_v56  ;;  %v4819_v1 = vcombine.high %v1752_v27, %v1756_v61  ;;  %v1802_v55 = vld [vmem:[#allocation2 + $0x6e0] sm:$0xff]  ;;  %v1800_v56 = vld [vmem:[#allocation2 + $0x6d0] sm:$0xff] }
 0x6c5   : > { %3191 = vmatpush1.bf16.msra.mxu0 %v4766_v25  ;;  %3355 = vmatpush1.bf16.msra.mxu1 %v4770_v26  ;;  %v1750_v25 = vld [vmem:[#allocation2 + $0x540] sm:$0xff] }
 0x6c6   : > { %3201 = vmatprep.subr.bf16.mxu0 %v4775_v0  ;;  %3365 = vmatprep.subr.bf16.mxu1 %v4779_v4  ;;  %v1754_v26 = vld [vmem:[#allocation2 + $0x560] sm:$0xff]  ;;  %v1760_v4 = vld [vmem:[#allocation2 + $0x590] sm:$0xff] }
 0x6c7   : > { %v4815_v0 = vcombine.high %v1750_v25, %v1754_v26 }
 0x75b   : > { %v1530_v14 = vpop.f32.mrb[24].mxu1  ;;  %v6029_v15 = vpop.f32.mrb[28].mxu0 }
 0x75c   : > { %v1531_v16 = vadd.f32 %v1530_v14, %v1319_v11  ;;  %v1532_v17 = vpop.f32.mrb[25].mxu1  ;;  %v1573_v18 = vpop.f32.mrb[29].mxu0  ;;  %v4814_v11 = vcombine.low %v1750_v25, %v1754_v26  ;;  %v4827_v14 = vcombine.high %v1760_v4, %v1764_v5  ;;  %v1806_v26 = vld [vmem:[#allocation2 + $0x700] sm:$0xff] }
 0x75d   : > { %v1533_v19 = vadd.f32 %v1532_v17, %v1323_v12  ;;  %v1534_v20 = vpop.f32.mrb[26].mxu1  ;;  %v1575_v21 = vpop.f32.mrb[30].mxu0  ;;  %v1574_v23 = vadd.f32 %v1573_v18, %v1331_v13  ;;  %v4818_v12 = vcombine.low %v1752_v27, %v1756_v61  ;;  %v1770_v17 = vld [vmem:[#allocation2 + $0x5e0] sm:$0xff]  ;;  %v1768_v18 = vld [vmem:[#allocation2 + $0x5d0] sm:$0xff] }
 0x75e   : > { %v1535_v24 = vpop.f32.mrb[27].mxu1  ;;  %v1576_v28 = vpop.f32.mrb[31].mxu0  ;;  %v6033_v33 = vpack.c.bf16 %v1531_v16, %v1531_v16  ;;  %v1766_v16 = vld [vmem:[#allocation2 + $0x5c0] sm:$0xff]  ;;  %v4826_v21 = vcombine.low %v1760_v4, %v1764_v5  ;;  %v1808_v61 = vld [vmem:[#allocation2 + $0x710] sm:$0xff] }
 0x75f   : > { %v6031_v32 = vpack.c.bf16 %v1533_v19, %v1533_v19  ;;  %v6037_v40 = vpack.c.bf16 %v1574_v23, %v1574_v23  ;;  %v1772_v19 = vld [vmem:[#allocation2 + $0x5f0] sm:$0xff]  ;;  %v4831_v22 = vcombine.high %v1766_v16, %v1770_v17  ;;  %v1774_v24 = vld [vmem:[#allocation2 + $0x600] sm:$0xff]  ;;  %v4830_v31 = vcombine.low %v1766_v16, %v1770_v17 }
 0x760   : > { %v4835_v23 = vcombine.high %v1768_v18, %v1772_v19  ;;  %v1778_v28 = vld [vmem:[#allocation2 + $0x620] sm:$0xff]  ;;  %v4834_v34 = vcombine.low %v1768_v18, %v1772_v19  ;;  %v1816_v5 = vld [vmem:[#allocation2 + $0x750] sm:$0xff] }
 0x761   : > { %3192 = vmatprep.mubr.bf16.mxu0 %v6031_v32  ;;  %3356 = vmatprep.mubr.bf16.mxu1 %v6031_v32  ;;  %v1810_v27 = vld [vmem:[#allocation2 + $0x720] sm:$0xff]  ;;  %v1824_v19 = vld [vmem:[#allocation2 + $0x790] sm:$0xff] }
 0x762   : > { %3193 = vmatmul.mubr.bf16.vlgmr.msra.gmra.mrb[32].mxu0 %v6033_v33  ;;  %3357 = vmatmul.mubr.bf16.vlgmr.msra.gmra.mrb[28].mxu1 %v6033_v33  ;;  %v1818_v4 = vld [vmem:[#allocation2 + $0x760] sm:$0xff] }
 0x763   : > { %3202 = vmatpush1.bf16.msra.mxu0 %v4774_v2  ;;  %3366 = vmatpush1.bf16.msra.mxu1 %v4778_v3  ;;  %v1758_v2 = vld [vmem:[#allocation2 + $0x580] sm:$0xff] }
 0x764   : > { %3233 = vmatprep.mubr.bf16.mxu0 %v6037_v40  ;;  %3397 = vmatprep.mubr.bf16.mxu1 %v6037_v40  ;;  %v1762_v3 = vld [vmem:[#allocation2 + $0x5a0] sm:$0xff] }
 0x765   : > { %3203 = vmatprep.subr.bf16.mxu0 %v4783_v35  ;;  %3367 = vmatprep.subr.bf16.mxu1 %v4787_v36  ;;  %v4823_v13 = vcombine.high %v1758_v2, %v1762_v3  ;;  %v4822_v20 = vcombine.low %v1758_v2, %v1762_v3  ;;  %v4839_v35 = vcombine.high %v1774_v24, %v1778_v28  ;;  %v1814_v3 = vld [vmem:[#allocation2 + $0x740] sm:$0xff] }
 0x766   : > { %v4843_v36 = vcombine.high %v1776_v29, %v1780_v30  ;;  %v1822_v17 = vld [vmem:[#allocation2 + $0x780] sm:$0xff] }
 0x767   : > { %3204 = vmatpush1.bf16.msra.mxu0 %v4782_v41  ;;  %3368 = vmatpush1.bf16.msra.mxu1 %v4786_v42  ;;  %v1788_v41 = vld [vmem:[#allocation2 + $0x670] sm:$0xff]  ;;  %v4838_v42 = vcombine.low %v1774_v24, %v1778_v28  ;;  %v1826_v18 = vld [vmem:[#allocation2 + $0x7a0] sm:$0xff] }
 0x768   : > { %3205 = vmatprep.subr.bf16.mxu0 %v4791_v43  ;;  %3369 = vmatprep.subr.bf16.mxu1 %v4795_v44  ;;  %v4842_v43 = vcombine.low %v1776_v29, %v1780_v30  ;;  %v4847_v44 = vcombine.high %v1782_v37, %v1786_v38  ;;  %v4851_v45 = vcombine.high %v1784_v39, %v1788_v41  ;;  %v1830_v29 = vld [vmem:[#allocation2 + $0x7c0] sm:$0xff] }
 0x769   : > { %v4887_v24 = vcombine.high %v1822_v17, %v1826_v18  ;;  %v1834_v30 = vld [vmem:[#allocation2 + $0x7e0] sm:$0xff] }
 0x76b   : > { %3206 = vmatpush1.bf16.msra.mxu0 %v4790_v49  ;;  %3370 = vmatpush1.bf16.msra.mxu1 %v4794_v50  ;;  %v1796_v49 = vld [vmem:[#allocation2 + $0x6b0] sm:$0xff]  ;;  %v4846_v50 = vcombine.low %v1782_v37, %v1786_v38  ;;  %v4895_v38 = vcombine.high %v1830_v29, %v1834_v30 }
 0x76c   : > { %3207 = vmatprep.subr.bf16.mxu0 %v4799_v51  ;;  %3371 = vmatprep.subr.bf16.mxu1 %v4803_v52  ;;  %v4850_v51 = vcombine.low %v1784_v39, %v1788_v41  ;;  %v4855_v52 = vcombine.high %v1790_v46, %v1794_v47  ;;  %v4859_v53 = vcombine.high %v1792_v48, %v1796_v49  ;;  %v1583_v41 = vld [vmem:[#allocation2 + $0x8] sm:$0xff] }
 0x76f   : > { %3208 = vmatpush1.bf16.msra.mxu0 %v4798_v57  ;;  %3372 = vmatpush1.bf16.msra.mxu1 %v4802_v58  ;;  %v1804_v57 = vld [vmem:[#allocation2 + $0x6f0] sm:$0xff]  ;;  %v4854_v58 = vcombine.low %v1790_v46, %v1794_v47  ;;  %v1591_v47 = vld [vmem:[#allocation2 + $0x48] sm:$0xff] }
 0x770   : > { %3209 = vmatprep.subr.bf16.mxu0 %v4807_v59  ;;  %3373 = vmatprep.subr.bf16.mxu1 %v4811_v60  ;;  %v4858_v59 = vcombine.low %v1792_v48, %v1796_v49  ;;  %v4863_v60 = vcombine.high %v1798_v54, %v1802_v55  ;;  %v4867_v25 = vcombine.high %v1800_v56, %v1804_v57  ;;  %v1595_v48 = vld [vmem:[#allocation2 + $0x68] sm:$0xff] }
 0x773   : > { %3210 = vmatpush1.bf16.msra.mxu0 %v4806_v62  ;;  %3374 = vmatpush1.bf16.msra.mxu1 %v4810_v63  ;;  %v1812_v62 = vld [vmem:[#allocation2 + $0x730] sm:$0xff]  ;;  %v4862_v63 = vcombine.low %v1798_v54, %v1802_v55  ;;  %v1607_v54 = vld [vmem:[#allocation2 + $0xc8] sm:$0xff] }
 0x774   : > { %3211 = vmatprep.subr.bf16.mxu0 %v4815_v0  ;;  %3375 = vmatprep.subr.bf16.mxu1 %v4819_v1  ;;  %v4866_v0 = vcombine.low %v1800_v56, %v1804_v57  ;;  %v4871_v1 = vcombine.high %v1806_v26, %v1810_v27  ;;  %v4875_v2 = vcombine.high %v1808_v61, %v1812_v62  ;;  %v1611_v55 = vld [vmem:[#allocation2 + $0xe8] sm:$0xff] }
 0x775   : > { %v4673_v57 = vcombine.high %v1607_v54, %v1611_v55 }
 0x777   : > { %3212 = vmatpush1.bf16.msra.mxu0 %v4814_v11  ;;  %3376 = vmatpush1.bf16.msra.mxu1 %v4818_v12  ;;  %v1820_v11 = vld [vmem:[#allocation2 + $0x770] sm:$0xff]  ;;  %v4870_v12 = vcombine.low %v1806_v26, %v1810_v27  ;;  %v1623_v26 = vld [vmem:[#allocation2 + $0x148] sm:$0xff] }
 0x778   : > { %3213 = vmatprep.subr.bf16.mxu0 %v4823_v13  ;;  %3377 = vmatprep.subr.bf16.mxu1 %v4827_v14  ;;  %v4874_v13 = vcombine.low %v1808_v61, %v1812_v62  ;;  %v4879_v14 = vcombine.high %v1814_v3, %v1818_v4  ;;  %v4883_v16 = vcombine.high %v1816_v5, %v1820_v11  ;;  %v1627_v27 = vld [vmem:[#allocation2 + $0x168] sm:$0xff] }
 0x779   : > { %v4689_v62 = vcombine.high %v1623_v26, %v1627_v27 }
 0x77b   : > { %3214 = vmatpush1.bf16.msra.mxu0 %v4822_v20  ;;  %3378 = vmatpush1.bf16.msra.mxu1 %v4826_v21  ;;  %v1828_v20 = vld [vmem:[#allocation2 + $0x7b0] sm:$0xff]  ;;  %v4878_v21 = vcombine.low %v1814_v3, %v1818_v4  ;;  %v1639_v3 = vld [vmem:[#allocation2 + $0x1c8] sm:$0xff] }
 0x77c   : > { %3215 = vmatprep.subr.bf16.mxu0 %v4831_v22  ;;  %3379 = vmatprep.subr.bf16.mxu1 %v4835_v23  ;;  %v4882_v22 = vcombine.low %v1816_v5, %v1820_v11  ;;  %v1326_v23 = vsub.s32 2, %v6008_v7  ;;  %v4891_v28 = vcombine.high %v1824_v19, %v1828_v20  ;;  %v1643_v4 = vld [vmem:[#allocation2 + $0x1e8] sm:$0xff] }
 0x77d   : > { %v4705_v11 = vcombine.high %v1639_v3, %v1643_v4 }
 0x77e   : > { %v1327_v37 = vrot.slane %v6016_v8, %v1326_v23 }
 0x77f   : > { %3216 = vmatpush1.bf16.msra.mxu0 %v4830_v31  ;;  %3380 = vmatpush1.bf16.msra.mxu1 %v4834_v34  ;;  %v1832_v31 = vld [vmem:[#allocation2 + $0x7d0] sm:$0xff] }
 0x780   : > { %3217 = vmatprep.subr.bf16.mxu0 %v4839_v35  ;;  %3381 = vmatprep.subr.bf16.mxu1 %v4843_v36  ;;  %v1836_v34 = vld [vmem:[#allocation2 + $0x7f0] sm:$0xff]  ;;  %v4886_v35 = vcombine.low %v1822_v17, %v1826_v18  ;;  %v4890_v36 = vcombine.low %v1824_v19, %v1828_v20  ;;  %v5358_v17 = vld [vmem:[#allocation4] ss:$8 sps:$4 sm:$0xff]   ;;  %v5360_v18 = vld [vmem:[#allocation4 + $0x4] ss:$8 sps:$4 sm:$0xff]  }
 0x781   : > { %v4899_v39 = vcombine.high %v1832_v31, %v1836_v34  ;;  %v1655_v19 = vld [vmem:[#allocation2 + $0x248] sm:$0xff] }
 0x782   : > { %v1659_v20 = vld [vmem:[#allocation2 + $0x268] sm:$0xff] }
 0x783   : > { %3218 = vmatpush1.bf16.msra.mxu0 %v4838_v42  ;;  %3382 = vmatpush1.bf16.msra.mxu1 %v4842_v43  ;;  %v1587_v42 = vld [vmem:[#allocation2 + $0x28] sm:$0xff]  ;;  %v4894_v43 = vcombine.low %v1830_v29, %v1834_v30 }
 0x784   : > { %3219 = vmatprep.subr.bf16.mxu0 %v4847_v44  ;;  %3383 = vmatprep.subr.bf16.mxu1 %v4851_v45  ;;  %v4898_v44 = vcombine.low %v1832_v31, %v1836_v34  ;;  %v1572_v45 = vadd.f32 %v6029_v15, %v1327_v37  ;;  %v4649_v46 = vcombine.high %v1583_v41, %v1587_v42  ;;  %v1663_v29 = vld [vmem:[#allocation2 + $0x288] sm:$0xff] }
 0x785   : > { %v4648_v8 = vcombine.low %v1583_v41, %v1587_v42  ;;  %v4656_v15 = vcombine.low %v1591_v47, %v1595_v48  ;;  %v1667_v30 = vld [vmem:[#allocation2 + $0x2a8] sm:$0xff]  ;;  %v4720_v31 = vcombine.low %v1655_v19, %v1659_v20  ;;  %v5367_v42 = vld [vmem:[#allocation4 + $0x30] ss:$8 sps:$4 sm:$0xff]  }
 0x786   : > { %v6048_v49 = vpack.c.bf16 %v1572_v45, %v1572_v45  ;;  %v4729_v34 = vcombine.high %v1663_v29, %v1667_v30  ;;  %v1671_v37 = vld [vmem:[#allocation2 + $0x2c8] sm:$0xff] }
 0x787   : > { %3220 = vmatpush1.bf16.msra.mxu0 %v4846_v50  ;;  %3384 = vmatpush1.bf16.msra.mxu1 %v4850_v51  ;;  %v4657_v50 = vcombine.high %v1591_v47, %v1595_v48  ;;  %v1599_v51 = vld [vmem:[#allocation2 + $0x88] sm:$0xff] }
 0x788   : > { %3221 = vmatprep.subr.bf16.mxu0 %v4855_v52  ;;  %3385 = vmatprep.subr.bf16.mxu1 %v4859_v53  ;;  %v1603_v52 = vld [vmem:[#allocation2 + $0xa8] sm:$0xff] }
 0x789   : > { %v4665_v53 = vcombine.high %v1599_v51, %v1603_v52  ;;  %v4664_v56 = vcombine.low %v1599_v51, %v1603_v52  ;;  %v1683_v45 = vld [vmem:[#allocation2 + $0x328] sm:$0xff] }
 0x78a   : > { %v5370_v48 = vld [vmem:[#allocation4 + $0x40] ss:$8 sps:$4 sm:$0xff]  }
 0x78b   : > { %3222 = vmatpush1.bf16.msra.mxu0 %v4854_v58  ;;  %3386 = vmatpush1.bf16.msra.mxu1 %v4858_v59  ;;  %v1615_v58 = vld [vmem:[#allocation2 + $0x108] sm:$0xff] }
 0x78c   : > { %3223 = vmatprep.subr.bf16.mxu0 %v4863_v60  ;;  %3387 = vmatprep.subr.bf16.mxu1 %v4867_v25  ;;  %v1619_v59 = vld [vmem:[#allocation2 + $0x128] sm:$0xff]  ;;  %v4672_v60 = vcombine.low %v1607_v54, %v1611_v55  ;;  %v5375_v54 = vld [vmem:[#allocation4 + $0x54] ss:$8 sps:$4 sm:$0xff]  }
 0x78d   : > { %v4681_v25 = vcombine.high %v1615_v58, %v1619_v59  ;;  %v4680_v61 = vcombine.low %v1615_v58, %v1619_v59  ;;  %v1691_v51 = vld [vmem:[#allocation2 + $0x368] sm:$0xff] }
 0x78e   : > { %v1695_v55 = vld [vmem:[#allocation2 + $0x388] sm:$0xff] }
 0x78f   : > { %3224 = vmatpush1.bf16.msra.mxu0 %v4862_v63  ;;  %3388 = vmatpush1.bf16.msra.mxu1 %v4866_v0  ;;  %v1631_v63 = vld [vmem:[#allocation2 + $0x188] sm:$0xff] }
 0x790   : > { %3225 = vmatprep.subr.bf16.mxu0 %v4871_v1  ;;  %3389 = vmatprep.subr.bf16.mxu1 %v4875_v2  ;;  %v1635_v0 = vld [vmem:[#allocation2 + $0x1a8] sm:$0xff]  ;;  %v4688_v1 = vcombine.low %v1623_v26, %v1627_v27 }
 0x791   : > { %v4697_v2 = vcombine.high %v1631_v63, %v1635_v0  ;;  %v4696_v5 = vcombine.low %v1631_v63, %v1635_v0  ;;  %v5376_v59 = vld [vmem:[#allocation4 + $0x60] ss:$8 sps:$4 sm:$0xff]   ;;  %v5381_v63 = vld [vmem:[#allocation4 + $0x74] ss:$8 sps:$4 sm:$0xff]  }
 0x792   : > { %v1707_v26 = vld [vmem:[#allocation2 + $0x3e8] sm:$0xff] }
 0x793   : > { %3226 = vmatpush1.bf16.msra.mxu0 %v4870_v12  ;;  %3390 = vmatpush1.bf16.msra.mxu1 %v4874_v13  ;;  %v1647_v12 = vld [vmem:[#allocation2 + $0x208] sm:$0xff] }
 0x794   : > { %3227 = vmatprep.subr.bf16.mxu0 %v4879_v14  ;;  %3391 = vmatprep.subr.bf16.mxu1 %v4883_v16  ;;  %v1651_v13 = vld [vmem:[#allocation2 + $0x228] sm:$0xff]  ;;  %v4704_v14 = vcombine.low %v1639_v3, %v1643_v4 }
 0x795   : > { %v4713_v16 = vcombine.high %v1647_v12, %v1651_v13  ;;  %v1711_v0 = vld [vmem:[#allocation2 + $0x408] sm:$0xff] }
 0x796   : > { %v5382_v4 = vld [vmem:[#allocation4 + $0x80] ss:$8 sps:$4 sm:$0xff]  }
 0x797   : > { %3228 = vmatpush1.bf16.msra.mxu0 %v4878_v21  ;;  %3392 = vmatpush1.bf16.msra.mxu1 %v4882_v22  ;;  %v4712_v21 = vcombine.low %v1647_v12, %v1651_v13  ;;  %v4721_v22 = vcombine.high %v1655_v19, %v1659_v20  ;;  %v1723_v12 = vld [vmem:[#allocation2 + $0x468] sm:$0xff]  ;;  %v5385_v19 = vld [vmem:[#allocation4 + $0x90] ss:$8 sps:$4 sm:$0xff]  }
 0x798   : > { %3229 = vmatprep.subr.bf16.mxu0 %v4887_v24  ;;  %3393 = vmatprep.subr.bf16.mxu1 %v4891_v28  ;;  %v5361_v24 = vld [vmem:[#allocation4 + $0x10] ss:$8 sps:$4 sm:$0xff]   ;;  %v5363_v28 = vld [vmem:[#allocation4 + $0x14] ss:$8 sps:$4 sm:$0xff]  }
 0x79b   : > { %3230 = vmatpush1.bf16.msra.mxu0 %v4886_v35  ;;  %3394 = vmatpush1.bf16.msra.mxu1 %v4890_v36  ;;  %v5364_v35 = vld [vmem:[#allocation4 + $0x20] ss:$8 sps:$4 sm:$0xff]   ;;  %v5366_v36 = vld [vmem:[#allocation4 + $0x24] ss:$8 sps:$4 sm:$0xff]  }
 0x79c   : > { %3231 = vmatprep.subr.bf16.mxu0 %v4895_v38  ;;  %3395 = vmatprep.subr.bf16.mxu1 %v4899_v39  ;;  %v1675_v38 = vld [vmem:[#allocation2 + $0x2e8] sm:$0xff]  ;;  %v4728_v39 = vcombine.low %v1663_v29, %v1667_v30 }
 0x79d   : > { %v4737_v41 = vcombine.high %v1671_v37, %v1675_v38  ;;  %v1739_v29 = vld [vmem:[#allocation2 + $0x4e8] sm:$0xff] }
 0x79f   : > { %3232 = vmatpush1.bf16.msra.mxu0 %v4894_v43  ;;  %3396 = vmatpush1.bf16.msra.mxu1 %v4898_v44  ;;  %v5369_v43 = vld [vmem:[#allocation4 + $0x34] ss:$8 sps:$4 sm:$0xff]   ;;  %v1679_v44 = vld [vmem:[#allocation2 + $0x308] sm:$0xff] }
 0x7a0   : > { %3242 = vmatprep.subr.bf16.mxu0 %v4649_v46  ;;  %4284 = vmatprep.subr.bf16.mxu1 %v5360_v18  ;;  %v4736_v46 = vcombine.low %v1671_v37, %v1675_v38  ;;  %v4745_v47 = vcombine.high %v1679_v44, %v1683_v45  ;;  %v4744_v52 = vcombine.low %v1679_v44, %v1683_v45  ;;  %v1731_v18 = vld [vmem:[#allocation2 + $0x4a8] sm:$0xff] }
 0x7a1   : > { %v1747_v37 = vld [vmem:[#allocation2 + $0x528] sm:$0xff] }
 0x7a2   : > { %3234 = vmatmul.mubr.bf16.vlgmr.msra.gmra.mrb[32].mxu0 %v6048_v49  ;;  %3398 = vmatmul.mubr.bf16.vlgmr.msra.gmra.mrb[28].mxu1 %v6048_v49  ;;  %v1755_v44 = vld [vmem:[#allocation2 + $0x568] sm:$0xff] }
 0x7a3   : > { %3243 = vmatpush1.bf16.msra.mxu0 %v4648_v8  ;;  %3274 = vmatprep.mubr.bf16.mxu0 %v6031_v32  ;;  %v5372_v8 = vld [vmem:[#allocation4 + $0x44] ss:$8 sps:$4 sm:$0xff]  }
 0x7a4   : > { %3244 = vmatprep.subr.bf16.mxu0 %v4657_v50  ;;  %4285 = vmatpush1.bf16.msra.mxu1 %v5358_v17  ;;  %v1687_v50 = vld [vmem:[#allocation2 + $0x348] sm:$0xff] }
 0x7a5   : > { %4286 = vmatprep.subr.bf16.mxu1 %v5363_v28  ;;  %v1727_v17 = vld [vmem:[#allocation2 + $0x488] sm:$0xff] }
 0x7a6   : > { %v1735_v28 = vld [vmem:[#allocation2 + $0x4c8] sm:$0xff]  ;;  %v4792_v30 = vcombine.low %v1727_v17, %v1731_v18 }
 0x7a7   : > { %3245 = vmatpush1.bf16.msra.mxu0 %v4656_v15  ;;  %v4753_v15 = vcombine.high %v1687_v50, %v1691_v51  ;;  %v4800_v38 = vcombine.low %v1735_v28, %v1739_v29 }
 0x7a8   : > { %3246 = vmatprep.subr.bf16.mxu0 %v4665_v53  ;;  %4287 = vmatpush1.bf16.msra.mxu1 %v5361_v24  ;;  %v5373_v53 = vld [vmem:[#allocation4 + $0x50] ss:$8 sps:$4 sm:$0xff]   ;;  %v5390_v24 = vld [vmem:[#allocation4 + $0xa4] ss:$8 sps:$4 sm:$0xff]  }
 0x7a9   : > { %4288 = vmatprep.subr.bf16.mxu1 %v5366_v36  ;;  %v1743_v36 = vld [vmem:[#allocation2 + $0x508] sm:$0xff] }
 0x7aa   : > { %v4808_v45 = vcombine.low %v1743_v36, %v1747_v37 }
 0x7ab   : > { %3247 = vmatpush1.bf16.msra.mxu0 %v4664_v56  ;;  %v1699_v56 = vld [vmem:[#allocation2 + $0x3a8] sm:$0xff] }
 0x7ac   : > { %3248 = vmatprep.subr.bf16.mxu0 %v4673_v57  ;;  %4289 = vmatpush1.bf16.msra.mxu1 %v5364_v35  ;;  %v4752_v57 = vcombine.low %v1687_v50, %v1691_v51  ;;  %v4761_v58 = vcombine.high %v1695_v55, %v1699_v56  ;;  %v4760_v27 = vcombine.low %v1695_v55, %v1699_v56  ;;  %v5393_v35 = vld [vmem:[#allocation4 + $0xb4] ss:$8 sps:$4 sm:$0xff]   ;;  %v1763_v50 = vld [vmem:[#allocation2 + $0x5a8] sm:$0xff] }
 0x7ad   : > { %4290 = vmatprep.subr.bf16.mxu1 %v5369_v43  ;;  %v1751_v43 = vld [vmem:[#allocation2 + $0x548] sm:$0xff] }
 0x7ae   : > { %v4816_v51 = vcombine.low %v1751_v43, %v1755_v44  ;;  %v5400_v55 = vld [vmem:[#allocation4 + $0xe0] ss:$8 sps:$4 sm:$0xff]  }
 0x7af   : > { %3249 = vmatpush1.bf16.msra.mxu0 %v4672_v60  ;;  %v5378_v60 = vld [vmem:[#allocation4 + $0x64] ss:$8 sps:$4 sm:$0xff]  }
 0x7b0   : > { %3250 = vmatprep.subr.bf16.mxu0 %v4681_v25  ;;  %4291 = vmatpush1.bf16.msra.mxu1 %v5367_v42  ;;  %v1703_v25 = vld [vmem:[#allocation2 + $0x3c8] sm:$0xff] }
 0x7b1   : > { %4292 = vmatprep.subr.bf16.mxu1 %v5372_v8  ;;  %v5396_v42 = vld [vmem:[#allocation4 + $0xc4] ss:$8 sps:$4 sm:$0xff]  }
 0x7b2   : > { %v1759_v8 = vld [vmem:[#allocation2 + $0x588] sm:$0xff] }
 0x7b3   : > { %3251 = vmatpush1.bf16.msra.mxu0 %v4680_v61  ;;  %v4769_v61 = vcombine.high %v1703_v25, %v1707_v26  ;;  %v4824_v56 = vcombine.low %v1759_v8, %v1763_v50 }
 0x7b4   : > { %3252 = vmatprep.subr.bf16.mxu0 %v4689_v62  ;;  %4293 = vmatpush1.bf16.msra.mxu1 %v5370_v48  ;;  %v5379_v62 = vld [vmem:[#allocation4 + $0x70] ss:$8 sps:$4 sm:$0xff]   ;;  %v5399_v48 = vld [vmem:[#allocation4 + $0xd4] ss:$8 sps:$4 sm:$0xff]  }
 0x7b5   : > { %4294 = vmatprep.subr.bf16.mxu1 %v5375_v54  ;;  %v1771_v54 = vld [vmem:[#allocation2 + $0x5e8] sm:$0xff] }
 0x7b7   : > { %3253 = vmatpush1.bf16.msra.mxu0 %v4688_v1  ;;  %v1715_v1 = vld [vmem:[#allocation2 + $0x428] sm:$0xff] }
 0x7b8   : > { %3254 = vmatprep.subr.bf16.mxu0 %v4697_v2  ;;  %4295 = vmatpush1.bf16.msra.mxu1 %v5373_v53  ;;  %v4768_v2 = vcombine.low %v1703_v25, %v1707_v26  ;;  %v4777_v3 = vcombine.high %v1711_v0, %v1715_v1  ;;  %v4776_v13 = vcombine.low %v1711_v0, %v1715_v1  ;;  %v1767_v53 = vld [vmem:[#allocation2 + $0x5c8] sm:$0xff]  ;;  %v5403_v25 = vld [vmem:[#allocation4 + $0xf0] ss:$8 sps:$4 sm:$0xff]  }
 0x7b9   : > { %4296 = vmatprep.subr.bf16.mxu1 %v5378_v60  ;;  %v1779_v60 = vld [vmem:[#allocation2 + $0x628] sm:$0xff]  ;;  %v4832_v26 = vcombine.low %v1767_v53, %v1771_v54 }
 0x7ba   : > { %v1791_v1 = vld [vmem:[#allocation2 + $0x688] sm:$0xff] }
 0x7bb   : > { %3255 = vmatpush1.bf16.msra.mxu0 %v4696_v5  ;;  %v5384_v5 = vld [vmem:[#allocation4 + $0x84] ss:$8 sps:$4 sm:$0xff]  }
 0x7bc   : > { %3256 = vmatprep.subr.bf16.mxu0 %v4705_v11  ;;  %4297 = vmatpush1.bf16.msra.mxu1 %v5376_v59  ;;  %v1719_v11 = vld [vmem:[#allocation2 + $0x448] sm:$0xff] }
 0x7bd   : > { %4298 = vmatprep.subr.bf16.mxu1 %v5381_v63  ;;  %v4784_v20 = vcombine.low %v1719_v11, %v1723_v12  ;;  %v1775_v59 = vld [vmem:[#allocation2 + $0x608] sm:$0xff] }
 0x7be   : > { %v4840_v63 = vcombine.low %v1775_v59, %v1779_v60 }
 0x7bf   : > { %3257 = vmatpush1.bf16.msra.mxu0 %v4704_v14  ;;  %v4785_v14 = vcombine.high %v1719_v11, %v1723_v12  ;;  %v1803_v11 = vld [vmem:[#allocation2 + $0x6e8] sm:$0xff] }
 0x7c0   : > { %3258 = vmatprep.subr.bf16.mxu0 %v4713_v16  ;;  %4299 = vmatpush1.bf16.msra.mxu1 %v5379_v62  ;;  %v5387_v16 = vld [vmem:[#allocation4 + $0x94] ss:$8 sps:$4 sm:$0xff]   ;;  %v1787_v62 = vld [vmem:[#allocation2 + $0x668] sm:$0xff] }
 0x7c1   : > { %4300 = vmatprep.subr.bf16.mxu1 %v5384_v5  ;;  %v1799_v5 = vld [vmem:[#allocation2 + $0x6c8] sm:$0xff] }
 0x7c3   : > { %3259 = vmatpush1.bf16.msra.mxu0 %v4712_v21  ;;  %v4793_v21 = vcombine.high %v1727_v17, %v1731_v18  ;;  %v4864_v17 = vcombine.low %v1799_v5, %v1803_v11 }
 0x7c4   : > { %3260 = vmatprep.subr.bf16.mxu0 %v4721_v22  ;;  %4301 = vmatpush1.bf16.msra.mxu1 %v5382_v4  ;;  %v5388_v22 = vld [vmem:[#allocation4 + $0xa0] ss:$8 sps:$4 sm:$0xff]  }
 0x7c5   : > { %4302 = vmatprep.subr.bf16.mxu1 %v5387_v16  ;;  %v1811_v16 = vld [vmem:[#allocation2 + $0x728] sm:$0xff] }
 0x7c7   : > { %3261 = vmatpush1.bf16.msra.mxu0 %v4720_v31  ;;  %v4801_v31 = vcombine.high %v1735_v28, %v1739_v29  ;;  %v1827_v28 = vld [vmem:[#allocation2 + $0x7a8] sm:$0xff] }
 0x7c8   : > { %3262 = vmatprep.subr.bf16.mxu0 %v4729_v34  ;;  %4303 = vmatpush1.bf16.msra.mxu1 %v5385_v19  ;;  %v5391_v34 = vld [vmem:[#allocation4 + $0xb0] ss:$8 sps:$4 sm:$0xff]   ;;  %v1815_v19 = vld [vmem:[#allocation2 + $0x748] sm:$0xff] }
 0x7c9   : > { %4304 = vmatprep.subr.bf16.mxu1 %v5390_v24  ;;  %v1823_v24 = vld [vmem:[#allocation2 + $0x788] sm:$0xff] }
 0x7cb   : > { %3263 = vmatpush1.bf16.msra.mxu0 %v4728_v39  ;;  %v4809_v39 = vcombine.high %v1743_v36, %v1747_v37  ;;  %v1585_v37 = vld [vmem:[#allocation2 + $0x18] sm:$0xff] }
 0x7cc   : > { %3264 = vmatprep.subr.bf16.mxu0 %v4737_v41  ;;  %4305 = vmatpush1.bf16.msra.mxu1 %v5388_v22  ;;  %v5394_v41 = vld [vmem:[#allocation4 + $0xc0] ss:$8 sps:$4 sm:$0xff]  }
 0x7cd   : > { %4306 = vmatprep.subr.bf16.mxu1 %v5393_v35  ;;  %v4888_v35 = vcombine.low %v1823_v24, %v1827_v28 }
 0x7cf   : > { %3265 = vmatpush1.bf16.msra.mxu0 %v4736_v46  ;;  %v4817_v46 = vcombine.high %v1751_v43, %v1755_v44  ;;  %v1597_v43 = vld [vmem:[#allocation2 + $0x78] sm:$0xff] }
 0x7d0   : > { %3266 = vmatprep.subr.bf16.mxu0 %v4745_v47  ;;  %4307 = vmatpush1.bf16.msra.mxu1 %v5391_v34  ;;  %v5397_v47 = vld [vmem:[#allocation4 + $0xd0] ss:$8 sps:$4 sm:$0xff]   ;;  %v1835_v34 = vld [vmem:[#allocation2 + $0x7e8] sm:$0xff] }
 0x7d1   : > { %4308 = vmatprep.subr.bf16.mxu1 %v5396_v42  ;;  %v1593_v42 = vld [vmem:[#allocation2 + $0x58] sm:$0xff] }
 0x7d3   : > { %3267 = vmatpush1.bf16.msra.mxu0 %v4744_v52  ;;  %v4825_v52 = vcombine.high %v1759_v8, %v1763_v50  ;;  %v4660_v8 = vcombine.low %v1593_v42, %v1597_v43 }
 0x7d4   : > { %3268 = vmatprep.subr.bf16.mxu0 %v4753_v15  ;;  %4309 = vmatpush1.bf16.msra.mxu1 %v5394_v41  ;;  %v5402_v15 = vld [vmem:[#allocation4 + $0xe4] ss:$8 sps:$4 sm:$0xff]  }
 0x7d5   : > { %4310 = vmatprep.subr.bf16.mxu1 %v5399_v48  ;;  %v5408_v48 = vld [vmem:[#allocation4 + $0x104] ss:$8 sps:$4 sm:$0xff]  }
 0x7d7   : > { %3269 = vmatpush1.bf16.msra.mxu0 %v4752_v57  ;;  %v4833_v57 = vcombine.high %v1767_v53, %v1771_v54  ;;  %v1617_v54 = vld [vmem:[#allocation2 + $0x118] sm:$0xff] }
 0x7d8   : > { %3270 = vmatprep.subr.bf16.mxu0 %v4761_v58  ;;  %4311 = vmatpush1.bf16.msra.mxu1 %v5397_v47  ;;  %v5405_v58 = vld [vmem:[#allocation4 + $0xf4] ss:$8 sps:$4 sm:$0xff]  }
 0x7d9   : > { %4312 = vmatprep.subr.bf16.mxu1 %v5402_v15  ;;  %v1605_v47 = vld [vmem:[#allocation2 + $0xb8] sm:$0xff] }
 0x7db   : > { %3271 = vmatpush1.bf16.msra.mxu0 %v4760_v27  ;;  %v4841_v27 = vcombine.high %v1775_v59, %v1779_v60  ;;  %v1629_v59 = vld [vmem:[#allocation2 + $0x178] sm:$0xff] }
 0x7dc   : > { %3272 = vmatprep.subr.bf16.mxu0 %v4769_v61  ;;  %4313 = vmatpush1.bf16.msra.mxu1 %v5400_v55  ;;  %v1783_v61 = vld [vmem:[#allocation2 + $0x648] sm:$0xff]  ;;  %v1621_v55 = vld [vmem:[#allocation2 + $0x138] sm:$0xff] }
 0x7dd   : > { %4314 = vmatprep.subr.bf16.mxu1 %v5405_v58  ;;  %v4849_v0 = vcombine.high %v1783_v61, %v1787_v62  ;;  %v1625_v58 = vld [vmem:[#allocation2 + $0x158] sm:$0xff] }
 0x7de   : > { %v4693_v60 = vcombine.high %v1625_v58, %v1629_v59 }
 0x7df   : > { %3273 = vmatpush1.bf16.msra.mxu0 %v4768_v2  ;;  %v1795_v2 = vld [vmem:[#allocation2 + $0x6a8] sm:$0xff] }
 0x7e0   : > { %3283 = vmatprep.subr.bf16.mxu0 %v4777_v3  ;;  %4315 = vmatpush1.bf16.msra.mxu1 %v5403_v25  ;;  %v4848_v3 = vcombine.low %v1783_v61, %v1787_v62  ;;  %v4857_v4 = vcombine.high %v1791_v1, %v1795_v2  ;;  %v4856_v12 = vcombine.low %v1791_v1, %v1795_v2  ;;  %v1633_v25 = vld [vmem:[#allocation2 + $0x198] sm:$0xff] }
 0x7e1   : > { %4325 = vmatprep.subr.bf16.mxu1 %v5408_v48  ;;  %v1641_v62 = vld [vmem:[#allocation2 + $0x1d8] sm:$0xff] }
 0x7e2   : > { %3275 = vmatmul.mubr.bf16.vlgmr.msra.gmra.mrb[36].mxu0 %v6033_v33  ;;  %v1649_v2 = vld [vmem:[#allocation2 + $0x218] sm:$0xff] }
 0x7e3   : > { %3284 = vmatpush1.bf16.msra.mxu0 %v4776_v13  ;;  %3315 = vmatprep.mubr.bf16.mxu0 %v6037_v40  ;;  %v4865_v13 = vcombine.high %v1799_v5, %v1803_v11  ;;  %v1657_v11 = vld [vmem:[#allocation2 + $0x258] sm:$0xff] }
 0x7e4   : > { %3285 = vmatprep.subr.bf16.mxu0 %v4785_v14  ;;  %v1807_v14 = vld [vmem:[#allocation2 + $0x708] sm:$0xff]  ;;  %v1717_v48 = vld [vmem:[#allocation2 + $0x438] sm:$0xff] }
 0x7e5   : > { %v4873_v18 = vcombine.high %v1807_v14, %v1811_v16 }
 0x7e7   : > { %3286 = vmatpush1.bf16.msra.mxu0 %v4784_v20  ;;  %v1819_v20 = vld [vmem:[#allocation2 + $0x768] sm:$0xff] }
 0x7e8   : > { %3287 = vmatprep.subr.bf16.mxu0 %v4793_v21  ;;  %v4872_v21 = vcombine.low %v1807_v14, %v1811_v16  ;;  %v4881_v22 = vcombine.high %v1815_v19, %v1819_v20  ;;  %v4880_v29 = vcombine.low %v1815_v19, %v1819_v20  ;;  %v1665_v16 = vld [vmem:[#allocation2 + $0x298] sm:$0xff] }
 0x7e9   : > { %v1673_v20 = vld [vmem:[#allocation2 + $0x2d8] sm:$0xff] }
 0x7eb   : > { %3288 = vmatpush1.bf16.msra.mxu0 %v4792_v30  ;;  %v4889_v30 = vcombine.high %v1823_v24, %v1827_v28  ;;  %v1681_v28 = vld [vmem:[#allocation2 + $0x318] sm:$0xff] }
 0x7ec   : > { %3289 = vmatprep.subr.bf16.mxu0 %v4801_v31  ;;  %v1831_v31 = vld [vmem:[#allocation2 + $0x7c8] sm:$0xff] }
 0x7ed   : > { %v4897_v36 = vcombine.high %v1831_v31, %v1835_v34 }
 0x7ef   : > { %3290 = vmatpush1.bf16.msra.mxu0 %v4800_v38  ;;  %v1589_v38 = vld [vmem:[#allocation2 + $0x38] sm:$0xff] }
 0x7f0   : > { %3291 = vmatprep.subr.bf16.mxu0 %v4809_v39  ;;  %v4896_v39 = vcombine.low %v1831_v31, %v1835_v34  ;;  %v4653_v41 = vcombine.high %v1585_v37, %v1589_v38  ;;  %v4652_v44 = vcombine.low %v1585_v37, %v1589_v38  ;;  %v1689_v34 = vld [vmem:[#allocation2 + $0x358] sm:$0xff] }
 0x7f1   : > { %v1697_v38 = vld [vmem:[#allocation2 + $0x398] sm:$0xff] }
 0x7f3   : > { %3292 = vmatpush1.bf16.msra.mxu0 %v4808_v45  ;;  %v4661_v45 = vcombine.high %v1593_v42, %v1597_v43  ;;  %v1705_v43 = vld [vmem:[#allocation2 + $0x3d8] sm:$0xff] }
 0x7f4   : > { %3293 = vmatprep.subr.bf16.mxu0 %v4817_v46  ;;  %v1601_v46 = vld [vmem:[#allocation2 + $0x98] sm:$0xff] }
 0x7f5   : > { %v4669_v50 = vcombine.high %v1601_v46, %v1605_v47  ;;  %v4668_v15 = vcombine.low %v1601_v46, %v1605_v47  ;;  %v1713_v47 = vld [vmem:[#allocation2 + $0x418] sm:$0xff] }
 0x7f7   : > { %3294 = vmatpush1.bf16.msra.mxu0 %v4816_v51  ;;  %v1609_v51 = vld [vmem:[#allocation2 + $0xd8] sm:$0xff] }
 0x7f8   : > { %3295 = vmatprep.subr.bf16.mxu0 %v4825_v52  ;;  %v1613_v52 = vld [vmem:[#allocation2 + $0xf8] sm:$0xff] }
 0x7f9   : > { %v4677_v53 = vcombine.high %v1609_v51, %v1613_v52 }
 0x7fb   : > { %3296 = vmatpush1.bf16.msra.mxu0 %v4824_v56  ;;  %v4676_v56 = vcombine.low %v1609_v51, %v1613_v52  ;;  %v1721_v51 = vld [vmem:[#allocation2 + $0x458] sm:$0xff] }
 0x7fc   : > { %3297 = vmatprep.subr.bf16.mxu0 %v4833_v57  ;;  %v4685_v57 = vcombine.high %v1617_v54, %v1621_v55  ;;  %v1725_v52 = vld [vmem:[#allocation2 + $0x478] sm:$0xff] }
 0x7ff   : > { %3298 = vmatpush1.bf16.msra.mxu0 %v4832_v26  ;;  %v1637_v26 = vld [vmem:[#allocation2 + $0x1b8] sm:$0xff] }
 0x800   : > { %3299 = vmatprep.subr.bf16.mxu0 %v4841_v27  ;;  %v4692_v27 = vcombine.low %v1625_v58, %v1629_v59  ;;  %v4701_v61 = vcombine.high %v1633_v25, %v1637_v26  ;;  %v1737_v58 = vld [vmem:[#allocation2 + $0x4d8] sm:$0xff] }
 0x801   : > { %v1741_v59 = vld [vmem:[#allocation2 + $0x4f8] sm:$0xff] }
 0x803   : > { %3300 = vmatpush1.bf16.msra.mxu0 %v4840_v63  ;;  %v1645_v63 = vld [vmem:[#allocation2 + $0x1f8] sm:$0xff] }
 0x804   : > { %3301 = vmatprep.subr.bf16.mxu0 %v4849_v0  ;;  %v4700_v0 = vcombine.low %v1633_v25, %v1637_v26  ;;  %v4709_v1 = vcombine.high %v1641_v62, %v1645_v63  ;;  %v1745_v25 = vld [vmem:[#allocation2 + $0x518] sm:$0xff] }
 0x805   : > { %v1749_v26 = vld [vmem:[#allocation2 + $0x538] sm:$0xff] }
 0x807   : > { %3302 = vmatpush1.bf16.msra.mxu0 %v4848_v3  ;;  %v1653_v3 = vld [vmem:[#allocation2 + $0x238] sm:$0xff] }
 0x808   : > { %3303 = vmatprep.subr.bf16.mxu0 %v4857_v4  ;;  %v4708_v4 = vcombine.low %v1641_v62, %v1645_v63  ;;  %v4717_v5 = vcombine.high %v1649_v2, %v1653_v3  ;;  %v1753_v62 = vld [vmem:[#allocation2 + $0x558] sm:$0xff]  ;;  %v4812_v63 = vcombine.low %v1745_v25, %v1749_v26 }
 0x80b   : > { %3304 = vmatpush1.bf16.msra.mxu0 %v4856_v12  ;;  %v1661_v12 = vld [vmem:[#allocation2 + $0x278] sm:$0xff] }
 0x80c   : > { %3305 = vmatprep.subr.bf16.mxu0 %v4865_v13  ;;  %v4716_v13 = vcombine.low %v1649_v2, %v1653_v3  ;;  %v4725_v14 = vcombine.high %v1657_v11, %v1661_v12  ;;  %v1765_v2 = vld [vmem:[#allocation2 + $0x5b8] sm:$0xff] }
 0x80f   : > { %3306 = vmatpush1.bf16.msra.mxu0 %v4864_v17  ;;  %v1669_v17 = vld [vmem:[#allocation2 + $0x2b8] sm:$0xff] }
 0x810   : > { %3307 = vmatprep.subr.bf16.mxu0 %v4873_v18  ;;  %v4724_v18 = vcombine.low %v1657_v11, %v1661_v12  ;;  %v4733_v19 = vcombine.high %v1665_v16, %v1669_v17 }
 0x813   : > { %3308 = vmatpush1.bf16.msra.mxu0 %v4872_v21  ;;  %v1677_v21 = vld [vmem:[#allocation2 + $0x2f8] sm:$0xff] }
 0x814   : > { %3309 = vmatprep.subr.bf16.mxu0 %v4881_v22  ;;  %v4732_v22 = vcombine.low %v1665_v16, %v1669_v17  ;;  %v4741_v24 = vcombine.high %v1673_v20, %v1677_v21  ;;  %v1773_v16 = vld [vmem:[#allocation2 + $0x5f8] sm:$0xff] }
 0x817   : > { %3310 = vmatpush1.bf16.msra.mxu0 %v4880_v29  ;;  %v1685_v29 = vld [vmem:[#allocation2 + $0x338] sm:$0xff] }
 0x818   : > { %3311 = vmatprep.subr.bf16.mxu0 %v4889_v30  ;;  %v4740_v30 = vcombine.low %v1673_v20, %v1677_v21  ;;  %v4749_v31 = vcombine.high %v1681_v28, %v1685_v29 }
 0x81b   : > { %3312 = vmatpush1.bf16.msra.mxu0 %v4888_v35  ;;  %v1693_v35 = vld [vmem:[#allocation2 + $0x378] sm:$0xff] }
 0x81c   : > { %3313 = vmatprep.subr.bf16.mxu0 %v4897_v36  ;;  %v4748_v36 = vcombine.low %v1681_v28, %v1685_v29  ;;  %v4757_v37 = vcombine.high %v1689_v34, %v1693_v35 }
 0x81f   : > { %3314 = vmatpush1.bf16.msra.mxu0 %v4896_v39  ;;  %v1701_v39 = vld [vmem:[#allocation2 + $0x3b8] sm:$0xff] }
 0x820   : > { %3406 = vmatprep.subr.bf16.mxu0 %v4653_v41  ;;  %v4756_v41 = vcombine.low %v1689_v34, %v1693_v35  ;;  %v4765_v42 = vcombine.high %v1697_v38, %v1701_v39  ;;  %v1777_v35 = vld [vmem:[#allocation2 + $0x618] sm:$0xff] }
 0x822   : > { %3316 = vmatmul.mubr.bf16.vlgmr.msra.gmra.mrb[36].mxu0 %v6048_v49 }
 0x823   : > { %3407 = vmatpush1.bf16.msra.mxu0 %v4652_v44  ;;  %3438 = vmatprep.mubr.bf16.mxu0 %v6031_v32  ;;  %v4684_v32 = vcombine.low %v1617_v54, %v1621_v55  ;;  %v1709_v44 = vld [vmem:[#allocation2 + $0x3f8] sm:$0xff] }
 0x824   : > { %3408 = vmatprep.subr.bf16.mxu0 %v4661_v45  ;;  %v4764_v45 = vcombine.low %v1697_v38, %v1701_v39  ;;  %v4773_v46 = vcombine.high %v1705_v43, %v1709_v44  ;;  %v1729_v54 = vld [vmem:[#allocation2 + $0x498] sm:$0xff]  ;;  %v5406_v39 = vld [vmem:[#allocation4 + $0x100] ss:$8 sps:$4 sm:$0xff]  }
 0x825   : > { %v1733_v55 = vld [vmem:[#allocation2 + $0x4b8] sm:$0xff] }
 0x827   : > { %3409 = vmatpush1.bf16.msra.mxu0 %v4660_v8  ;;  %v4772_v8 = vcombine.low %v1705_v43, %v1709_v44  ;;  %v5411_v43 = vld [vmem:[#allocation4 + $0x114] ss:$8 sps:$4 sm:$0xff]  }
 0x828   : > { %3410 = vmatprep.subr.bf16.mxu0 %v4669_v50  ;;  %v4781_v50 = vcombine.high %v1713_v47, %v1717_v48  ;;  %v1785_v44 = vld [vmem:[#allocation2 + $0x658] sm:$0xff] }
 0x82b   : > { %3411 = vmatpush1.bf16.msra.mxu0 %v4668_v15  ;;  %v4780_v15 = vcombine.low %v1713_v47, %v1717_v48  ;;  %v5409_v47 = vld [vmem:[#allocation4 + $0x110] ss:$8 sps:$4 sm:$0xff]  }
 0x82c   : > { %3412 = vmatprep.subr.bf16.mxu0 %v4677_v53  ;;  %v4789_v53 = vcombine.high %v1721_v51, %v1725_v52 }
 0x82f   : > { %3413 = vmatpush1.bf16.msra.mxu0 %v4676_v56  ;;  %v4788_v56 = vcombine.low %v1721_v51, %v1725_v52  ;;  %v1797_v51 = vld [vmem:[#allocation2 + $0x6b8] sm:$0xff] }
 0x830   : > { %3414 = vmatprep.subr.bf16.mxu0 %v4685_v57  ;;  %v4797_v57 = vcombine.high %v1729_v54, %v1733_v55 }
 0x833   : > { %3415 = vmatpush1.bf16.msra.mxu0 %v4684_v32  ;;  %v4796_v32 = vcombine.low %v1729_v54, %v1733_v55  ;;  %v5417_v54 = vld [vmem:[#allocation4 + $0x134] ss:$8 sps:$4 sm:$0xff]  }
 0x834   : > { %3416 = vmatprep.subr.bf16.mxu0 %v4693_v60  ;;  %v4805_v60 = vcombine.high %v1737_v58, %v1741_v59  ;;  %v1801_v55 = vld [vmem:[#allocation2 + $0x6d8] sm:$0xff] }
 0x837   : > { %3417 = vmatpush1.bf16.msra.mxu0 %v4692_v27  ;;  %v4804_v27 = vcombine.low %v1737_v58, %v1741_v59  ;;  %v5415_v58 = vld [vmem:[#allocation4 + $0x130] ss:$8 sps:$4 sm:$0xff]  }
 0x838   : > { %3418 = vmatprep.subr.bf16.mxu0 %v4701_v61  ;;  %v4813_v61 = vcombine.high %v1745_v25, %v1749_v26  ;;  %v1813_v25 = vld [vmem:[#allocation2 + $0x738] sm:$0xff] }
 0x83b   : > { %3419 = vmatpush1.bf16.msra.mxu0 %v4700_v0 }
 0x83c   : > { %3420 = vmatprep.subr.bf16.mxu0 %v4709_v1  ;;  %v1761_v1 = vld [vmem:[#allocation2 + $0x598] sm:$0xff] }
 0x83d   : > { %v4829_v11 = vcombine.high %v1761_v1, %v1765_v2 }
 0x83f   : > { %3421 = vmatpush1.bf16.msra.mxu0 %v4708_v4 }
 0x840   : > { %3422 = vmatprep.subr.bf16.mxu0 %v4717_v5 }
 0x843   : > { %3423 = vmatpush1.bf16.msra.mxu0 %v4716_v13 }
 0x844   : > { %3424 = vmatprep.subr.bf16.mxu0 %v4725_v14  ;;  %v1769_v14 = vld [vmem:[#allocation2 + $0x5d8] sm:$0xff] }
 0x845   : > { %v4836_v38 = vcombine.low %v1769_v14, %v1773_v16 }
 0x847   : > { %3425 = vmatpush1.bf16.msra.mxu0 %v4724_v18 }
 0x848   : > { %3426 = vmatprep.subr.bf16.mxu0 %v4733_v19 }
 0x84b   : > { %3427 = vmatpush1.bf16.msra.mxu0 %v4732_v22 }
 0x84c   : > { %3428 = vmatprep.subr.bf16.mxu0 %v4741_v24  ;;  %v4828_v24 = vcombine.low %v1761_v1, %v1765_v2  ;;  %v5421_v1 = vld [vmem:[#allocation4 + $0x150] ss:$8 sps:$4 sm:$0xff]  }
 0x84f   : > { %3429 = vmatpush1.bf16.msra.mxu0 %v4740_v30 }
 0x850   : > { %3430 = vmatprep.subr.bf16.mxu0 %v4749_v31  ;;  %v4837_v31 = vcombine.high %v1769_v14, %v1773_v16  ;;  %v5429_v16 = vld [vmem:[#allocation4 + $0x174] ss:$8 sps:$4 sm:$0xff]  }
 0x853   : > { %3431 = vmatpush1.bf16.msra.mxu0 %v4748_v36  ;;  %v1781_v36 = vld [vmem:[#allocation2 + $0x638] sm:$0xff] }
 0x854   : > { %3432 = vmatprep.subr.bf16.mxu0 %v4757_v37 }
 0x857   : > { %3433 = vmatpush1.bf16.msra.mxu0 %v4756_v41 }
 0x858   : > { %3434 = vmatprep.subr.bf16.mxu0 %v4765_v42  ;;  %v4845_v42 = vcombine.high %v1777_v35, %v1781_v36 }
 0x85b   : > { %3435 = vmatpush1.bf16.msra.mxu0 %v4764_v45  ;;  %v1789_v45 = vld [vmem:[#allocation2 + $0x678] sm:$0xff] }
 0x85c   : > { %3436 = vmatprep.subr.bf16.mxu0 %v4773_v46  ;;  %v4844_v46 = vcombine.low %v1777_v35, %v1781_v36  ;;  %v4853_v48 = vcombine.high %v1785_v44, %v1789_v45  ;;  %v4852_v52 = vcombine.low %v1785_v44, %v1789_v45  ;;  %v5436_v35 = vld [vmem:[#allocation4 + $0x1a0] ss:$8 sps:$4 sm:$0xff]   ;;  %v5441_v36 = vld [vmem:[#allocation4 + $0x1b4] ss:$8 sps:$4 sm:$0xff]   ;;  %v5451_v45 = vld [vmem:[#allocation4 + $0x1f0] ss:$8 sps:$4 sm:$0xff]  }
 0x85d   : > { %v5448_v44 = vld [vmem:[#allocation4 + $0x1e0] ss:$8 sps:$4 sm:$0xff]  }
 0x85f   : > { %3437 = vmatpush1.bf16.msra.mxu0 %v4772_v8  ;;  %v5414_v8 = vld [vmem:[#allocation4 + $0x124] ss:$8 sps:$4 sm:$0xff]  }
 0x860   : > { %3447 = vmatprep.subr.bf16.mxu0 %v4781_v50  ;;  %v1793_v50 = vld [vmem:[#allocation2 + $0x698] sm:$0xff] }
 0x862   : > { %3439 = vmatmul.mubr.bf16.vlgmr.msra.gmra.mrb[40].mxu0 %v6033_v33  ;;  %v1757_v33 = vld [vmem:[#allocation2 + $0x578] sm:$0xff] }
 0x863   : > { %3448 = vmatpush1.bf16.msra.mxu0 %v4780_v15  ;;  %3479 = vmatprep.mubr.bf16.mxu0 %v6037_v40  ;;  %v6062_v40 = vld [vmem:[%s6113_s12] sm:$0xff]  ;;  %v4821_v0 = vcombine.high %v1753_v62, %v1757_v33  ;;  %v4820_v5 = vcombine.low %v1753_v62, %v1757_v33  ;;  %v5423_v62 = vld [vmem:[#allocation4 + $0x154] ss:$8 sps:$4 sm:$0xff]  }
 0x864   : > { %3449 = vmatprep.subr.bf16.mxu0 %v4789_v53  ;;  %v1843_v3 = vrot.slane %v6062_v40, %v6011_v6  ;;  %v1847_v4 = vrot.slane %v6062_v40, %v6019_v9  ;;  %v5412_v15 = vld [vmem:[#allocation4 + $0x120] ss:$8 sps:$4 sm:$0xff]   ;;  %v4861_v53 = vcombine.high %v1793_v50, %v1797_v51  ;;  %v1817_v33 = vld [vmem:[#allocation2 + $0x758] sm:$0xff] }
 0x867   : > { %3450 = vmatpush1.bf16.msra.mxu0 %v4788_v56  ;;  %v1805_v56 = vld [vmem:[#allocation2 + $0x6f8] sm:$0xff] }
 0x868   : > { %3451 = vmatprep.subr.bf16.mxu0 %v4797_v57  ;;  %v4860_v57 = vcombine.low %v1793_v50, %v1797_v51  ;;  %v4869_v59 = vcombine.high %v1801_v55, %v1805_v56  ;;  %v4868_v26 = vcombine.low %v1801_v55, %v1805_v56  ;;  %v1855_v50 = vrot.slane %v6062_v40, %v1330_v10  ;;  %v5457_v10 = vld [vmem:[#allocation4 + $0x210] ss:$8 sps:$4 sm:$0xff]  }
 0x86b   : > { %3452 = vmatpush1.bf16.msra.mxu0 %v4796_v32  ;;  %v5420_v32 = vld [vmem:[#allocation4 + $0x144] ss:$8 sps:$4 sm:$0xff]  }
 0x86c   : > { %3453 = vmatprep.subr.bf16.mxu0 %v4805_v60  ;;  %v1809_v60 = vld [vmem:[#allocation2 + $0x718] sm:$0xff] }
 0x86f   : > { %3454 = vmatpush1.bf16.msra.mxu0 %v4804_v27  ;;  %v5418_v27 = vld [vmem:[#allocation4 + $0x140] ss:$8 sps:$4 sm:$0xff]  }
 0x870   : > { %3455 = vmatprep.subr.bf16.mxu0 %v4813_v61  ;;  %v4877_v61 = vcombine.high %v1809_v60, %v1813_v25 }
 0x873   : > { %3456 = vmatpush1.bf16.msra.mxu0 %v4812_v63  ;;  %v1821_v63 = vld [vmem:[#allocation2 + $0x778] sm:$0xff] }
 0x874   : > { %3457 = vmatprep.subr.bf16.mxu0 %v4821_v0  ;;  %v4876_v0 = vcombine.low %v1809_v60, %v1813_v25  ;;  %v4885_v2 = vcombine.high %v1817_v33, %v1821_v63  ;;  %v5454_v60 = vld [vmem:[#allocation4 + $0x200] ss:$8 sps:$4 sm:$0xff]  }
 0x875   : > { %v3235_v12 = vpop.f32.mrb[32].mxu0  ;;  %v6068_v13 = vpop.f32.mrb[28].mxu1 }
 0x876   : > { %v5211_v17 = vadd.f32 %v3235_v12, %v1843_v3  ;;  %v3237_v18 = vpop.f32.mrb[33].mxu0  ;;  %v6070_v19 = vpop.f32.mrb[29].mxu1  ;;  %v5426_v3 = vld [vmem:[#allocation4 + $0x164] ss:$8 sps:$4 sm:$0xff]   ;;  %v5424_v12 = vld [vmem:[#allocation4 + $0x160] ss:$8 sps:$4 sm:$0xff]  }
 0x877   : > { %v5212_v20 = vadd.f32 %v3237_v18, %v1847_v4  ;;  %v3239_v21 = vpop.f32.mrb[34].mxu0  ;;  %v3403_v22 = vpop.f32.mrb[30].mxu1  ;;  %3458 = vmatpush1.bf16.msra.mxu0 %v4820_v5  ;;  %v1825_v4 = vld [vmem:[#allocation2 + $0x798] sm:$0xff] }
 0x878   : > { %v3488_v28 = vmax.f32 %v5211_v17, 0.0  ;;  %v3240_v29 = vpop.f32.mrb[35].mxu0  ;;  %v3404_v30 = vpop.f32.mrb[31].mxu1  ;;  %3459 = vmatprep.subr.bf16.mxu0 %v4829_v11  ;;  %v1829_v5 = vld [vmem:[#allocation2 + $0x7b8] sm:$0xff]  ;;  %v4884_v11 = vcombine.low %v1817_v33, %v1821_v63  ;;  %v5468_v33 = vld [vmem:[#allocation4 + $0x244] ss:$8 sps:$4 sm:$0xff]  }
 0x879   : > { %v3489_v34 = vmax.f32 %v5212_v20, 0.0  ;;  %v4893_v14 = vcombine.high %v1825_v4, %v1829_v5  ;;  %v1833_v17 = vld [vmem:[#allocation2 + $0x7d8] sm:$0xff]  ;;  %v4892_v20 = vcombine.low %v1825_v4, %v1829_v5  ;;  %v5430_v29 = vld [vmem:[#allocation4 + $0x180] ss:$8 sps:$4 sm:$0xff]  }
 0x87a   : > { %v3496_v41 = vpack.c.bf16 %v3488_v28, %v3488_v28  ;;  %v1837_v18 = vld [vmem:[#allocation2 + $0x7f8] sm:$0xff]  ;;  %v5466_v63 = vld [vmem:[#allocation4 + $0x240] ss:$8 sps:$4 sm:$0xff]  }
 0x87b   : > { %v3497_v37 = vpack.c.bf16 %v3489_v34, %v3489_v34  ;;  %3460 = vmatpush1.bf16.msra.mxu0 %v4828_v24  ;;  %v5427_v21 = vld [vmem:[#allocation4 + $0x170] ss:$8 sps:$4 sm:$0xff]   ;;  %v4901_v22 = vcombine.high %v1833_v17, %v1837_v18  ;;  %v5432_v24 = vld [vmem:[#allocation4 + $0x184] ss:$8 sps:$4 sm:$0xff]   ;;  %v4900_v28 = vcombine.low %v1833_v17, %v1837_v18  ;;  %v5435_v30 = vld [vmem:[#allocation4 + $0x194] ss:$8 sps:$4 sm:$0xff]  }
 0x87c   : > { %3461 = vmatprep.subr.bf16.mxu0 %v4837_v31  ;;  %v5433_v31 = vld [vmem:[#allocation4 + $0x190] ss:$8 sps:$4 sm:$0xff]   ;;  %v5438_v34 = vld [vmem:[#allocation4 + $0x1a4] ss:$8 sps:$4 sm:$0xff]   ;;  %v5477_v4 = vld [vmem:[#allocation4 + $0x274] ss:$8 sps:$4 sm:$0xff]  }
 0x87d   : > { %4316 = vmatprep.mubr.bf16.mxu1 %v3497_v37  ;;  %v5439_v37 = vld [vmem:[#allocation4 + $0x1b0] ss:$8 sps:$4 sm:$0xff]   ;;  %v5486_v17 = vld [vmem:[#allocation4 + $0x2a4] ss:$8 sps:$4 sm:$0xff]   ;;  %v5484_v18 = vld [vmem:[#allocation4 + $0x2a0] ss:$8 sps:$4 sm:$0xff]  }
 0x87e   : > { %4317 = vmatmul.mubr.bf16.vlgmr.msra.gmra.mrb[32].mxu1 %v3496_v41  ;;  %v5447_v41 = vld [vmem:[#allocation4 + $0x1d4] ss:$8 sps:$4 sm:$0xff]   ;;  %v5475_v5 = vld [vmem:[#allocation4 + $0x270] ss:$8 sps:$4 sm:$0xff]  }
 0x87f   : > { %3462 = vmatpush1.bf16.msra.mxu0 %v4836_v38  ;;  %4326 = vmatpush1.bf16.msra.mxu1 %v5406_v39  ;;  %v5444_v38 = vld [vmem:[#allocation4 + $0x1c4] ss:$8 sps:$4 sm:$0xff]   ;;  %v5442_v39 = vld [vmem:[#allocation4 + $0x1c0] ss:$8 sps:$4 sm:$0xff]  }
 0x880   : > { %3463 = vmatprep.subr.bf16.mxu0 %v4845_v42  ;;  %4327 = vmatprep.subr.bf16.mxu1 %v5411_v43  ;;  %v5445_v42 = vld [vmem:[#allocation4 + $0x1d0] ss:$8 sps:$4 sm:$0xff]   ;;  %v5450_v43 = vld [vmem:[#allocation4 + $0x1e4] ss:$8 sps:$4 sm:$0xff]  }
 0x883   : > { %3464 = vmatpush1.bf16.msra.mxu0 %v4844_v46  ;;  %4328 = vmatpush1.bf16.msra.mxu1 %v5409_v47  ;;  %v5456_v46 = vld [vmem:[#allocation4 + $0x204] ss:$8 sps:$4 sm:$0xff]   ;;  %v1862_v47 = vsub.s32 5, %v6008_v7 }
 0x884   : > { %3465 = vmatprep.subr.bf16.mxu0 %v4853_v48  ;;  %4329 = vmatprep.subr.bf16.mxu1 %v5414_v8  ;;  %v1851_v8 = vrot.slane %v6062_v40, %v1326_v23 }
 0x885   : > { %v1863_v48 = vrot.slane %v6062_v40, %v1862_v47  ;;  %v5511_v47 = vld [vmem:[#allocation4 + $0x330] ss:$8 sps:$4 sm:$0xff]  }
 0x887   : > { %3466 = vmatpush1.bf16.msra.mxu0 %v4852_v52  ;;  %4330 = vmatpush1.bf16.msra.mxu1 %v5412_v15  ;;  %v5216_v51 = vadd.f32 %v6070_v19, %v1863_v48  ;;  %v5462_v19 = vld [vmem:[#allocation4 + $0x224] ss:$8 sps:$4 sm:$0xff]  }
 0x888   : > { %3467 = vmatprep.subr.bf16.mxu0 %v4861_v53  ;;  %4331 = vmatprep.subr.bf16.mxu1 %v5417_v54  ;;  %v5516_v48 = vld [vmem:[#allocation4 + $0x344] ss:$8 sps:$4 sm:$0xff]  }
 0x88b   : > { %3468 = vmatpush1.bf16.msra.mxu0 %v4860_v57  ;;  %4332 = vmatpush1.bf16.msra.mxu1 %v5415_v58  ;;  %v3493_v58 = vmax.f32 %v5216_v51, 0.0  ;;  %v5517_v51 = vld [vmem:[#allocation4 + $0x350] ss:$8 sps:$4 sm:$0xff]  }
 0x88c   : > { %3469 = vmatprep.subr.bf16.mxu0 %v4869_v59  ;;  %4333 = vmatprep.subr.bf16.mxu1 %v5420_v32 }
 0x88d   : > { %v3501_v23 = vpack.c.bf16 %v3493_v58, %v3493_v58  ;;  %v5529_v58 = vld [vmem:[#allocation4 + $0x390] ss:$8 sps:$4 sm:$0xff]  }
 0x88f   : > { %3470 = vmatpush1.bf16.msra.mxu0 %v4868_v26  ;;  %4334 = vmatpush1.bf16.msra.mxu1 %v5418_v27  ;;  %v5459_v26 = vld [vmem:[#allocation4 + $0x214] ss:$8 sps:$4 sm:$0xff]   ;;  %v5460_v27 = vld [vmem:[#allocation4 + $0x220] ss:$8 sps:$4 sm:$0xff]  }
 0x890   : > { %3471 = vmatprep.subr.bf16.mxu0 %v4877_v61  ;;  %4335 = vmatprep.subr.bf16.mxu1 %v5423_v62  ;;  %v5465_v61 = vld [vmem:[#allocation4 + $0x234] ss:$8 sps:$4 sm:$0xff]   ;;  %v5463_v62 = vld [vmem:[#allocation4 + $0x230] ss:$8 sps:$4 sm:$0xff]  }
 0x893   : > { %3472 = vmatpush1.bf16.msra.mxu0 %v4876_v0  ;;  %4336 = vmatpush1.bf16.msra.mxu1 %v5421_v1  ;;  %v5471_v0 = vld [vmem:[#allocation4 + $0x254] ss:$8 sps:$4 sm:$0xff]   ;;  %v5469_v1 = vld [vmem:[#allocation4 + $0x250] ss:$8 sps:$4 sm:$0xff]  }
 0x894   : > { %3473 = vmatprep.subr.bf16.mxu0 %v4885_v2  ;;  %4337 = vmatprep.subr.bf16.mxu1 %v5426_v3  ;;  %v5474_v2 = vld [vmem:[#allocation4 + $0x264] ss:$8 sps:$4 sm:$0xff]   ;;  %v5472_v3 = vld [vmem:[#allocation4 + $0x260] ss:$8 sps:$4 sm:$0xff]  }
 0x897   : > { %3474 = vmatpush1.bf16.msra.mxu0 %v4884_v11  ;;  %4338 = vmatpush1.bf16.msra.mxu1 %v5424_v12  ;;  %v5480_v11 = vld [vmem:[#allocation4 + $0x284] ss:$8 sps:$4 sm:$0xff]   ;;  %v5478_v12 = vld [vmem:[#allocation4 + $0x280] ss:$8 sps:$4 sm:$0xff]  }
 0x898   : > { %3475 = vmatprep.subr.bf16.mxu0 %v4893_v14  ;;  %4339 = vmatprep.subr.bf16.mxu1 %v5429_v16  ;;  %v5483_v14 = vld [vmem:[#allocation4 + $0x294] ss:$8 sps:$4 sm:$0xff]   ;;  %v5481_v16 = vld [vmem:[#allocation4 + $0x290] ss:$8 sps:$4 sm:$0xff]  }
 0x89b   : > { %3476 = vmatpush1.bf16.msra.mxu0 %v4892_v20  ;;  %4340 = vmatpush1.bf16.msra.mxu1 %v5427_v21  ;;  %v5489_v20 = vld [vmem:[#allocation4 + $0x2b4] ss:$8 sps:$4 sm:$0xff]   ;;  %v5487_v21 = vld [vmem:[#allocation4 + $0x2b0] ss:$8 sps:$4 sm:$0xff]  }
 0x89c   : > { %3477 = vmatprep.subr.bf16.mxu0 %v4901_v22  ;;  %4341 = vmatprep.subr.bf16.mxu1 %v5432_v24  ;;  %v5492_v22 = vld [vmem:[#allocation4 + $0x2c4] ss:$8 sps:$4 sm:$0xff]   ;;  %v5490_v24 = vld [vmem:[#allocation4 + $0x2c0] ss:$8 sps:$4 sm:$0xff]  }
 0x89f   : > { %3478 = vmatpush1.bf16.msra.mxu0 %v4900_v28  ;;  %4342 = vmatpush1.bf16.msra.mxu1 %v5430_v29  ;;  %v1858_v28 = vsub.s32 4, %v6008_v7  ;;  %v5495_v29 = vld [vmem:[#allocation4 + $0x2d4] ss:$8 sps:$4 sm:$0xff]  }
 0x8a0   : > { %4343 = vmatprep.subr.bf16.mxu1 %v5435_v30  ;;  %v5493_v30 = vld [vmem:[#allocation4 + $0x2d0] ss:$8 sps:$4 sm:$0xff]  }
 0x8a2   : > { %3480 = vmatmul.mubr.bf16.vlgmr.msra.gmra.mrb[40].mxu0 %v6048_v49  ;;  %v5453_v49 = vld [vmem:[#allocation4 + $0x1f4] ss:$8 sps:$4 sm:$0xff]  }
 0x8a3   : > { %4344 = vmatpush1.bf16.msra.mxu1 %v5433_v31  ;;  %v1859_v31 = vrot.slane %v6062_v40, %v1858_v28 }
 0x8a4   : > { %4345 = vmatprep.subr.bf16.mxu1 %v5438_v34  ;;  %v5498_v34 = vld [vmem:[#allocation4 + $0x2e4] ss:$8 sps:$4 sm:$0xff]  }
 0x8a7   : > { %4346 = vmatpush1.bf16.msra.mxu1 %v5436_v35  ;;  %v5496_v35 = vld [vmem:[#allocation4 + $0x2e0] ss:$8 sps:$4 sm:$0xff]  }
 0x8a8   : > { %4347 = vmatprep.subr.bf16.mxu1 %v5441_v36  ;;  %v5215_v36 = vadd.f32 %v6068_v13, %v1859_v31  ;;  %v5513_v13 = vld [vmem:[#allocation4 + $0x334] ss:$8 sps:$4 sm:$0xff]  }
 0x8ab   : > { %4348 = vmatpush1.bf16.msra.mxu1 %v5439_v37  ;;  %v5501_v37 = vld [vmem:[#allocation4 + $0x2f4] ss:$8 sps:$4 sm:$0xff]  }
 0x8ac   : > { %4349 = vmatprep.subr.bf16.mxu1 %v5444_v38  ;;  %v5499_v38 = vld [vmem:[#allocation4 + $0x2f0] ss:$8 sps:$4 sm:$0xff]  }
 0x8af   : > { %4350 = vmatpush1.bf16.msra.mxu1 %v5442_v39  ;;  %v3492_v39 = vmax.f32 %v5215_v36, 0.0 }
 0x8b0   : > { %4351 = vmatprep.subr.bf16.mxu1 %v5447_v41  ;;  %v5504_v41 = vld [vmem:[#allocation4 + $0x304] ss:$8 sps:$4 sm:$0xff]  }
 0x8b3   : > { %4352 = vmatpush1.bf16.msra.mxu1 %v5445_v42  ;;  %v5502_v42 = vld [vmem:[#allocation4 + $0x300] ss:$8 sps:$4 sm:$0xff]  }
 0x8b4   : > { %4353 = vmatprep.subr.bf16.mxu1 %v5450_v43  ;;  %v3500_v43 = vpack.c.bf16 %v3492_v39, %v3492_v39 }
 0x8b7   : > { %4354 = vmatpush1.bf16.msra.mxu1 %v5448_v44  ;;  %v5507_v44 = vld [vmem:[#allocation4 + $0x314] ss:$8 sps:$4 sm:$0xff]  }
 0x8b8   : > { %4355 = vmatprep.subr.bf16.mxu1 %v5453_v49  ;;  %v5505_v49 = vld [vmem:[#allocation4 + $0x310] ss:$8 sps:$4 sm:$0xff]  }
 0x8bb   : > { %4356 = vmatpush1.bf16.msra.mxu1 %v5451_v45  ;;  %v5510_v45 = vld [vmem:[#allocation4 + $0x324] ss:$8 sps:$4 sm:$0xff]  }
 0x8bc   : > { %4366 = vmatprep.subr.bf16.mxu1 %v5456_v46  ;;  %v5508_v46 = vld [vmem:[#allocation4 + $0x320] ss:$8 sps:$4 sm:$0xff]  }
 0x8f5   : > { %v3317_v52 = vpop.f32.mrb[36].mxu0 }
 0x8f6   : > { %v5213_v15 = vadd.f32 %v3317_v52, %v1851_v8  ;;  %v3319_v53 = vpop.f32.mrb[37].mxu0  ;;  %v5514_v8 = vld [vmem:[#allocation4 + $0x340] ss:$8 sps:$4 sm:$0xff]   ;;  %v5522_v52 = vld [vmem:[#allocation4 + $0x364] ss:$8 sps:$4 sm:$0xff]  }
 0x8f7   : > { %v5214_v54 = vadd.f32 %v3319_v53, %v1855_v50  ;;  %v3321_v55 = vpop.f32.mrb[38].mxu0  ;;  %v5519_v50 = vld [vmem:[#allocation4 + $0x354] ss:$8 sps:$4 sm:$0xff]  }
 0x8f8   : > { %v3490_v56 = vmax.f32 %v5213_v15, 0.0  ;;  %v3322_v57 = vpop.f32.mrb[39].mxu0  ;;  %v5520_v15 = vld [vmem:[#allocation4 + $0x360] ss:$8 sps:$4 sm:$0xff]   ;;  %v5525_v53 = vld [vmem:[#allocation4 + $0x374] ss:$8 sps:$4 sm:$0xff]  }
 0x8f9   : > { %v3491_v59 = vmax.f32 %v5214_v54, 0.0  ;;  %v5523_v54 = vld [vmem:[#allocation4 + $0x370] ss:$8 sps:$4 sm:$0xff]   ;;  %v5528_v55 = vld [vmem:[#allocation4 + $0x384] ss:$8 sps:$4 sm:$0xff]  }
 0x8fa   : > { %v3498_v25 = vpack.c.bf16 %v3490_v56, %v3490_v56  ;;  %v5526_v56 = vld [vmem:[#allocation4 + $0x380] ss:$8 sps:$4 sm:$0xff]   ;;  %v5531_v57 = vld [vmem:[#allocation4 + $0x394] ss:$8 sps:$4 sm:$0xff]  }
 0x8fb   : > { %v3499_v32 = vpack.c.bf16 %v3491_v59, %v3491_v59  ;;  %v5534_v59 = vld [vmem:[#allocation4 + $0x3a4] ss:$8 sps:$4 sm:$0xff]  }
 0x8fd   : > { %4357 = vmatprep.mubr.bf16.mxu1 %v3499_v32  ;;  %v5532_v32 = vld [vmem:[#allocation4 + $0x3a0] ss:$8 sps:$4 sm:$0xff]  }
 0x8fe   : > { %4358 = vmatmul.mubr.bf16.vlgmr.msra.gmra.mrb[32].mxu1 %v3498_v25  ;;  %v5535_v25 = vld [vmem:[#allocation4 + $0x3b0] ss:$8 sps:$4 sm:$0xff]  }
 0x8ff   : > { %4367 = vmatpush1.bf16.msra.mxu1 %v5454_v60  ;;  %4398 = vmatprep.mubr.bf16.mxu1 %v3501_v23  ;;  %v5537_v60 = vld [vmem:[#allocation4 + $0x3b4] ss:$8 sps:$4 sm:$0xff]   ;;  %v5538_v23 = vld [vmem:[#allocation4 + $0x3c0] ss:$8 sps:$4 sm:$0xff]  }
 0x900   : > { %4368 = vmatprep.subr.bf16.mxu1 %v5459_v26  ;;  %v5540_v26 = vld [vmem:[#allocation4 + $0x3c4] ss:$8 sps:$4 sm:$0xff]  }
 0x903   : > { %4369 = vmatpush1.bf16.msra.mxu1 %v5457_v10  ;;  %v5543_v10 = vld [vmem:[#allocation4 + $0x3d4] ss:$8 sps:$4 sm:$0xff]  }
 0x904   : > { %4370 = vmatprep.subr.bf16.mxu1 %v5462_v19  ;;  %v1866_v19 = vsub.s32 6, %v6008_v7 }
 0x907   : > { %4371 = vmatpush1.bf16.msra.mxu1 %v5460_v27  ;;  %v5541_v27 = vld [vmem:[#allocation4 + $0x3d0] ss:$8 sps:$4 sm:$0xff]  }
 0x908   : > { %4372 = vmatprep.subr.bf16.mxu1 %v5465_v61  ;;  %v1870_v61 = vsub.s32 7, %v6008_v7 }
 0x90b   : > { %4373 = vmatpush1.bf16.msra.mxu1 %v5463_v62  ;;  %v5546_v62 = vld [vmem:[#allocation4 + $0x3e4] ss:$8 sps:$4 sm:$0xff]  }
 0x90c   : > { %4374 = vmatprep.subr.bf16.mxu1 %v5468_v33  ;;  %v1867_v33 = vrot.slane %v6062_v40, %v1866_v19 }
 0x90f   : > { %4375 = vmatpush1.bf16.msra.mxu1 %v5466_v63  ;;  %v1871_v63 = vrot.slane %v6062_v40, %v1870_v61  ;;  %v3632_v40 = vld [vmem:[%s6115_s14] sm:$0x3] }
 0x910   : > { %4376 = vmatprep.subr.bf16.mxu1 %v5471_v0  ;;  %v5544_v0 = vld [vmem:[#allocation4 + $0x3e0] ss:$8 sps:$4 sm:$0xff]  }
 0x913   : > { %4377 = vmatpush1.bf16.msra.mxu1 %v5469_v1  ;;  %v5549_v1 = vld [vmem:[#allocation4 + $0x3f4] ss:$8 sps:$4 sm:$0xff]  }
 0x914   : > { %4378 = vmatprep.subr.bf16.mxu1 %v5474_v2 }
 0x917   : > { %4379 = vmatpush1.bf16.msra.mxu1 %v5472_v3 }
 0x918   : > { %4380 = vmatprep.subr.bf16.mxu1 %v5477_v4 }
 0x91b   : > { %4381 = vmatpush1.bf16.msra.mxu1 %v5475_v5 }
 0x91c   : > { %4382 = vmatprep.subr.bf16.mxu1 %v5480_v11 }
 0x91f   : > { %4383 = vmatpush1.bf16.msra.mxu1 %v5478_v12  ;;  %v5547_v12 = vld [vmem:[#allocation4 + $0x3f0] ss:$8 sps:$4 sm:$0xff]  }
 0x920   : > { %4384 = vmatprep.subr.bf16.mxu1 %v5483_v14 }
 0x923   : > { %4385 = vmatpush1.bf16.msra.mxu1 %v5481_v16 }
 0x924   : > { %4386 = vmatprep.subr.bf16.mxu1 %v5486_v17 }
 0x927   : > { %4387 = vmatpush1.bf16.msra.mxu1 %v5484_v18 }
 0x928   : > { %4388 = vmatprep.subr.bf16.mxu1 %v5489_v20  ;;  %v3637_v20 = vrot.slane %v3632_v40, %v6011_v6 }
 0x92b   : > { %4389 = vmatpush1.bf16.msra.mxu1 %v5487_v21  ;;  %v3641_v21 = vrot.slane %v3632_v40, %v6019_v9 }
 0x92c   : > { %4390 = vmatprep.subr.bf16.mxu1 %v5492_v22 }
 0x92f   : > { %4391 = vmatpush1.bf16.msra.mxu1 %v5490_v24 }
 0x930   : > { %4392 = vmatprep.subr.bf16.mxu1 %v5495_v29 }
 0x933   : > { %4393 = vmatpush1.bf16.msra.mxu1 %v5493_v30 }
 0x934   : > { %4394 = vmatprep.subr.bf16.mxu1 %v5498_v34 }
 0x937   : > { %4395 = vmatpush1.bf16.msra.mxu1 %v5496_v35 }
 0x938   : > { %4396 = vmatprep.subr.bf16.mxu1 %v5501_v37 }
 0x93b   : > { %4397 = vmatpush1.bf16.msra.mxu1 %v5499_v38 }
 0x93c   : > { %4407 = vmatprep.subr.bf16.mxu1 %v5504_v41 }
 0x93e   : > { %4399 = vmatmul.mubr.bf16.vlgmr.msra.gmra.mrb[32].mxu1 %v3500_v43 }
 0x93f   : > { %4408 = vmatpush1.bf16.msra.mxu1 %v5502_v42 }
 0x940   : > { %4409 = vmatprep.subr.bf16.mxu1 %v5507_v44 }
 0x943   : > { %4410 = vmatpush1.bf16.msra.mxu1 %v5505_v49 }
 0x944   : > { %4411 = vmatprep.subr.bf16.mxu1 %v5510_v45 }
 0x947   : > { %4412 = vmatpush1.bf16.msra.mxu1 %v5508_v46 }
 0x948   : > { %4413 = vmatprep.subr.bf16.mxu1 %v5513_v13 }
 0x94b   : > { %4414 = vmatpush1.bf16.msra.mxu1 %v5511_v47 }
 0x94c   : > { %4415 = vmatprep.subr.bf16.mxu1 %v5516_v48 }
 0x94f   : > { %4416 = vmatpush1.bf16.msra.mxu1 %v5514_v8 }
 0x950   : > { %4417 = vmatprep.subr.bf16.mxu1 %v5519_v50 }
 0x953   : > { %4418 = vmatpush1.bf16.msra.mxu1 %v5517_v51 }
 0x954   : > { %4419 = vmatprep.subr.bf16.mxu1 %v5522_v52 }
 0x957   : > { %4420 = vmatpush1.bf16.msra.mxu1 %v5520_v15 }
 0x958   : > { %4421 = vmatprep.subr.bf16.mxu1 %v5525_v53 }
 0x95b   : > { %4422 = vmatpush1.bf16.msra.mxu1 %v5523_v54 }
 0x95c   : > { %4423 = vmatprep.subr.bf16.mxu1 %v5528_v55 }
 0x95f   : > { %4424 = vmatpush1.bf16.msra.mxu1 %v5526_v56 }
 0x960   : > { %4425 = vmatprep.subr.bf16.mxu1 %v5531_v57 }
 0x963   : > { %4426 = vmatpush1.bf16.msra.mxu1 %v5529_v58 }
 0x964   : > { %4427 = vmatprep.subr.bf16.mxu1 %v5534_v59 }
 0x967   : > { %4428 = vmatpush1.bf16.msra.mxu1 %v5532_v32 }
 0x968   : > { %4429 = vmatprep.subr.bf16.mxu1 %v5537_v60 }
 0x96b   : > { %4430 = vmatpush1.bf16.msra.mxu1 %v5535_v25 }
 0x96c   : > { %4431 = vmatprep.subr.bf16.mxu1 %v5540_v26 }
 0x96f   : > { %4432 = vmatpush1.bf16.msra.mxu1 %v5538_v23 }
 0x970   : > { %4433 = vmatprep.subr.bf16.mxu1 %v5543_v10 }
 0x973   : > { %4434 = vmatpush1.bf16.msra.mxu1 %v5541_v27 }
 0x974   : > { %4435 = vmatprep.subr.bf16.mxu1 %v5546_v62 }
 0x975   : > { %v3481_v2 = vpop.f32.mrb[40].mxu0 }
 0x976   : > { %v5217_v3 = vadd.f32 %v3481_v2, %v1867_v33  ;;  %v3483_v4 = vpop.f32.mrb[41].mxu0 }
 0x977   : > { %v5218_v5 = vadd.f32 %v3483_v4, %v1871_v63  ;;  %v3485_v11 = vpop.f32.mrb[42].mxu0  ;;  %4436 = vmatpush1.bf16.msra.mxu1 %v5544_v0 }
 0x978   : > { %v3494_v14 = vmax.f32 %v5217_v3, 0.0  ;;  %v3486_v7 = vpop.f32.mrb[43].mxu0  ;;  %4437 = vmatprep.subr.bf16.mxu1 %v5549_v1 }
 0x979   : > { %v3495_v16 = vmax.f32 %v5218_v5, 0.0 }
 0x97a   : > { %v3502_v18 = vpack.c.bf16 %v3494_v14, %v3494_v14 }
 0x97b   : > { %v3503_v17 = vpack.c.bf16 %v3495_v16, %v3495_v16  ;;  %4438 = vmatpush1.bf16.msra.mxu1 %v5547_v12 }
 0x97d   : > { %4439 = vmatprep.mubr.bf16.mxu1 %v3503_v17 }
 0x97e   : > { %4440 = vmatmul.mubr.bf16.vlgmr.msra.gmra.mrb[32].mxu1 %v3502_v18 }
 0xa51   : > { %v4441_v22 = vpop.f32.mrb[32].mxu1 }
 0xa52   : > { %v5219_v24 = vadd.f32 %v4441_v22, %v3637_v20  ;;  %v4443_v28 = vpop.f32.mrb[33].mxu1 }
 0xa53   : > { %v5220_v29 = vadd.f32 %v4443_v28, %v3641_v21  ;;  %v4445_v30 = vpop.f32.mrb[34].mxu1 }
 0xa54   : > { %v4446_v31 = vpop.f32.mrb[35].mxu1 }
 0xa55   : > { %v4450_v34 = vcombine.low %v5219_v24, %v5220_v29 }
 0xa57   : > { %4452 = vst [vmem:[%s561_s29] sm:$0xff] %v4450_v34 }
 0xa58 PF: > { %s6130_s30 = sld [smem:[#allocation8_spill]] }
 0xa5e   : > { %s27_s18 = sadd.s32 1, %s6130_s30  }
 0xa5f   : > { %p24_p5 = scmp.ge.s32.totalorder %s27_s18, 4  }
 0xa61   :  { %26 = sbr.rel (!%p24_p5) target bundleno = 4 (0x4), region = 125 }
 0xa68   :  { %4474 = vsyncpa [#allocation3], 1 }
 0xa69   :  { %4476 = vsyncpa [#allocation3 + $0x1], 1 }
 0xa6a   :  { %4477 = vsyncpa [#allocation5], 1 }

</bundles_post_ra>
